<compile_context>
chip_gen: v6e
topology: v6e:2x2x1
jax: 0.10.0
libtpu: 0.0.40
codegen_flags: <defaults>
</compile_context>

<pallas_src>
import jax
import jax.numpy as jnp
from jax.experimental import pallas as pl
from jax.experimental.pallas import tpu as pltpu


def _simclr_fused_kernel(xcol_ref, wc_ref, bc_ref, w1_ref, b1_ref,
                         w2_ref, b2_ref, out_ref):
    # xcol_ref: (TB, H*W, Kc)  bf16 lane-dense im2col rows (one view, one tile)
    # wc_ref  : (Kc, Fp)       bf16 conv weight (rows beyond 9*C are zero)
    # w1_ref  : (Fp, Fp), w2_ref: (Fp, Pp)  bf16 head weights
    # bc/b1/b2: (1, Fp/Fp/Pp)  f32 biases
    # out_ref : (TB, Pp)       f32
    tb, hw, kc = xcol_ref.shape
    fp = wc_ref.shape[-1]

    # ---- 3x3 conv (padding=1) as ONE im2col matmul; bf16 in, f32 acc ----
    lhs = xcol_ref[...].reshape(tb * hw, kc)
    conv = jnp.dot(lhs, wc_ref[...], preferred_element_type=jnp.float32)
    # conv bias must be added BEFORE the ReLU (nonlinear), then ReLU.
    conv = jnp.maximum(conv + bc_ref[...], 0.0)                 # (TB*HW, Fp)

    # ---- global average pool over spatial positions -> (TB, Fp) ----
    feat = jnp.mean(conv.reshape(tb, hw, fp), axis=1)

    # ---- projection head: Linear -> ReLU -> Linear (bf16 in, f32 acc) ----
    z = jnp.dot(feat.astype(jnp.bfloat16), w1_ref[...],
                preferred_element_type=jnp.float32) + b1_ref[...]
    z = jnp.maximum(z, 0.0)
    z = jnp.dot(z.astype(jnp.bfloat16), w2_ref[...],
                preferred_element_type=jnp.float32) + b2_ref[...]

    # ---- F.normalize(z, dim=-1) (eps=1e-12 on the norm) via EUP rsqrt ----
    sumsq = jnp.sum(z * z, axis=-1, keepdims=True)
    inv = jax.lax.rsqrt(jnp.maximum(sumsq, 1e-24))
    out_ref[...] = (z * inv).astype(out_ref.dtype)


def _round_up(n, m):
    return (n + m - 1) // m * m


@jax.jit
def simclr_forward(x, params):
    """x: [B, 2, C, H, W] (NCHW views) -> [B, 2, projection_dim]."""
    wc, bc, w1, b1, w2, b2 = params        # wc: (3, 3, C, F)  (HWIO)
    B, V, C, H, W = x.shape
    F = wc.shape[-1]
    P = w2.shape[-1]
    HW = H * W
    K = 9 * C                              # im2col contraction depth
    Kc = _round_up(max(K, 128), 128)       # lane-dense im2col width
    Fp = _round_up(max(F, 128), 128)       # lane-dense hidden width
    Pp = _round_up(max(P, 128), 128)       # lane-dense projection width

    # Sublane-aligned batch tile; pad B up instead of falling back to TB=B.
    # Cap at 64 so conv intermediates (~TB*256 KiB) fit v7x's 64 MiB VMEM.
    TB = min(64, _round_up(B, 8))
    Bp = _round_up(B, TB)
    NB = Bp // TB

    # ---- wrapper-side im2col, lane-dense K (9x HBM inflation OK at small B)
    xv = jnp.transpose(x, (1, 0, 3, 4, 2)).astype(jnp.float32)    # (V,B,H,W,C)
    xpad = jnp.pad(xv, ((0, 0), (0, 0), (1, 1), (1, 1), (0, 0)))
    cols = jnp.concatenate(
        [xpad[:, :, di:di + H, dj:dj + W, :]
         for di in range(3) for dj in range(3)], axis=-1)          # (V,B,H,W,9C)
    cols = cols.reshape(V, B, HW, K)
    cols = jnp.pad(cols, ((0, 0), (0, Bp - B), (0, 0), (0, Kc - K)))
    cols = cols.astype(jnp.bfloat16)       # matmul operand dtype; halves DMA

    # ---- weights: zero-pad (numerically exact) and cast matmul operands ----
    wc_p = jnp.pad(wc.reshape(K, F),
                   ((0, Kc - K), (0, Fp - F))).astype(jnp.bfloat16)
    w1_p = jnp.pad(w1, ((0, Fp - F), (0, Fp - F))).astype(jnp.bfloat16)
    w2_p = jnp.pad(w2, ((0, Fp - F), (0, Pp - P))).astype(jnp.bfloat16)
    bc_p = jnp.pad(bc.reshape(1, F), ((0, 0), (0, Fp - F))).astype(jnp.float32)
    b1_p = jnp.pad(b1.reshape(1, F), ((0, 0), (0, Fp - F))).astype(jnp.float32)
    b2_p = jnp.pad(b2.reshape(1, P), ((0, 0), (0, Pp - P))).astype(jnp.float32)

    flops = 2 * V * Bp * (HW * Kc * Fp + Fp * Fp + Fp * Pp)
    bytes_accessed = (2 * (cols.size + wc_p.size + w1_p.size + w2_p.size)
                      + 4 * (bc_p.size + b1_p.size + b2_p.size + Bp * V * Pp))

    def wspec(shape):
        # Full-array block, constant index_map: identical block at every grid
        # step, so it stays resident in VMEM (no per-step re-DMA).
        return pl.BlockSpec(shape, lambda v, nb: (0,) * len(shape))

    out = pl.pallas_call(
        _simclr_fused_kernel,
        grid=(V, NB),
        out_shape=jax.ShapeDtypeStruct((Bp, V * Pp), jnp.float32),
        in_specs=[
            pl.BlockSpec((None, TB, HW, Kc), lambda v, nb: (v, nb, 0, 0)),
            wspec((Kc, Fp)),       # conv weight (im2col form)
            wspec((1, Fp)),        # conv bias
            wspec((Fp, Fp)),       # head linear 1
            wspec((1, Fp)),
            wspec((Fp, Pp)),       # head linear 2
            wspec((1, Pp)),
        ],
        # Lane-dense output slab: view v writes lanes [v*Pp, (v+1)*Pp).
        out_specs=pl.BlockSpec((TB, Pp), lambda v, nb: (nb, v)),
        compiler_params=pltpu.CompilerParams(
            dimension_semantics=("parallel", "parallel"),
            vmem_limit_bytes=48 * 1024 * 1024),
        cost_estimate=pl.CostEstimate(flops=flops,
                                      transcendentals=V * Bp,
                                      bytes_accessed=bytes_accessed),
    )(cols, wc_p, bc_p, w1_p, b1_p, w2_p, b2_p)

    # (Bp, V*Pp) -> (B, 2, P); pure reshape + slice, no transpose needed.
    return out.reshape(Bp, V, Pp)[:B, :, :P]


def _reference_forward(x, params):
    """Pure-JAX f32 reference used only to sanity-check the Pallas kernel."""
    wc, bc, w1, b1, w2, b2 = params        # wc: (3, 3, C, F)

    def view(xv):                          # xv: (B, C, H, W)
        Bv, C, H, W = xv.shape
        F = wc.shape[-1]
        xh = jnp.transpose(xv, (0, 2, 3, 1))
        xp = jnp.pad(xh, ((0, 0), (1, 1), (1, 1), (0, 0)))
        conv = jnp.zeros((Bv, H, W, F), jnp.float32)
        for di in range(3):
            for dj in range(3):
                conv = conv + jnp.einsum("bhwc,cf->bhwf",
                                         xp[:, di:di + H, dj:dj + W, :],
                                         wc[di, dj])
        conv = jnp.maximum(conv + bc, 0.0)
        hfeat = jnp.mean(conv.reshape(Bv, H * W, F), axis=1)
        z = jnp.maximum(hfeat @ w1 + b1, 0.0)
        z = z @ w2 + b2
        nrm = jnp.sqrt(jnp.sum(z * z, axis=-1, keepdims=True))
        return z / jnp.maximum(nrm, 1e-12)

    return jnp.stack([view(x[:, 0]), view(x[:, 1])], axis=1)


if __name__ == "__main__":
    B, C, H, W = 2, 4, 16, 16          # batch, channels, spatial
    FEAT, PROJ = 32, 128               # encoder in_features, projection_dim

    key = jax.random.PRNGKey(0)
    ks = jax.random.split(key, 7)
    wc = jax.random.normal(ks[0], (3, 3, C, FEAT), jnp.float32) * 0.1
    bc = jax.random.normal(ks[1], (FEAT,), jnp.float32) * 0.01
    w1 = jax.random.normal(ks[2], (FEAT, FEAT), jnp.float32) * 0.1
    b1 = jax.random.normal(ks[3], (FEAT,), jnp.float32) * 0.01
    w2 = jax.random.normal(ks[4], (FEAT, PROJ), jnp.float32) * 0.1
    b2 = jax.random.normal(ks[5], (PROJ,), jnp.float32) * 0.01
    params = (wc, bc, w1, b1, w2, b2)

    x = jax.random.normal(ks[6], (B, 2, C, H, W), jnp.float32)

    out = jax.block_until_ready(simclr_forward(x, params))
    ref = jax.block_until_ready(_reference_forward(x, params))

    assert out.shape == (B, 2, PROJ), out.shape
    # bf16 matmul operands (f32 accumulation) vs f32 reference: looser tol.
    assert jnp.allclose(out, ref, atol=2e-2, rtol=2e-2), "mismatch vs reference"

    print("KERNEL_OK")
</pallas_src>

<mosaic_0001>
module attributes {stable_mosaic.version = 11 : i64} {
  func.func @_simclr_fused_kernel(%arg0: i32, %arg1: i32, %arg2: memref<1x8x256x128xbf16, #tpu.memory_space<vmem>>, %arg3: memref<128x128xbf16, #tpu.memory_space<vmem>>, %arg4: memref<1x128xf32, #tpu.memory_space<vmem>>, %arg5: memref<128x128xbf16, #tpu.memory_space<vmem>>, %arg6: memref<1x128xf32, #tpu.memory_space<vmem>>, %arg7: memref<128x128xbf16, #tpu.memory_space<vmem>>, %arg8: memref<1x128xf32, #tpu.memory_space<vmem>>, %arg9: memref<8x128xf32, #tpu.memory_space<vmem>>) attributes {dimension_semantics = [#tpu.dimension_semantics<parallel>, #tpu.dimension_semantics<parallel>], iteration_bounds = array<i64: 2, 1>, scalar_prefetch = 0 : i64, scratch_operands = 0 : i64, tpu.core_type = #tpu.core_type<tc>, window_params = [{transform_indices = @transform_0, window_bounds = array<i64: 1, 8, 256, 128>}, {pipeline_mode = #tpu.pipeline_mode<synchronous>, transform_indices = @transform_1, window_bounds = array<i64: 128, 128>}, {pipeline_mode = #tpu.pipeline_mode<synchronous>, transform_indices = @transform_2, window_bounds = array<i64: 1, 128>}, {pipeline_mode = #tpu.pipeline_mode<synchronous>, transform_indices = @transform_3, window_bounds = array<i64: 128, 128>}, {pipeline_mode = #tpu.pipeline_mode<synchronous>, transform_indices = @transform_4, window_bounds = array<i64: 1, 128>}, {pipeline_mode = #tpu.pipeline_mode<synchronous>, transform_indices = @transform_5, window_bounds = array<i64: 128, 128>}, {pipeline_mode = #tpu.pipeline_mode<synchronous>, transform_indices = @transform_6, window_bounds = array<i64: 1, 128>}, {transform_indices = @transform_7, window_bounds = array<i64: 8, 128>}]} {
    %c0 = arith.constant 0 : index
    %c0_0 = arith.constant 0 : index
    %c0_1 = arith.constant 0 : index
    %c0_2 = arith.constant 0 : index
    %0 = vector.load %arg2[%c0, %c0_0, %c0_1, %c0_2] : memref<1x8x256x128xbf16, #tpu.memory_space<vmem>>, vector<1x8x256x128xbf16>
    %1 = vector.shape_cast %0 : vector<1x8x256x128xbf16> to vector<8x256x128xbf16>
    %2 = vector.shape_cast %1 : vector<8x256x128xbf16> to vector<2048x128xbf16>
    %c0_3 = arith.constant 0 : index
    %c0_4 = arith.constant 0 : index
    %3 = vector.load %arg3[%c0_3, %c0_4] : memref<128x128xbf16, #tpu.memory_space<vmem>>, vector<128x128xbf16>
    %cst = arith.constant dense<0.000000e+00> : vector<2048x128xf32>
    %4 = tpu.matmul %2, %3, %cst {dimension_numbers = #tpu.dot_dimension_numbers<[1], [0], [0], [1], [0, 0, 1, 1], [], []>} : vector<2048x128xbf16>, vector<128x128xbf16>, vector<2048x128xf32> -> vector<2048x128xf32>
    %c0_5 = arith.constant 0 : index
    %c0_6 = arith.constant 0 : index
    %5 = vector.load %arg4[%c0_5, %c0_6] : memref<1x128xf32, #tpu.memory_space<vmem>>, vector<1x128xf32>
    %6 = vector.broadcast %5 : vector<1x128xf32> to vector<2048x128xf32>
    %7 = arith.addf %4, %6 : vector<2048x128xf32>
    %cst_7 = arith.constant 0.000000e+00 : f32
    %8 = vector.broadcast %cst_7 : f32 to vector<2048x128xf32>
    %9 = arith.maximumf %7, %8 : vector<2048x128xf32>
    %10 = vector.shape_cast %9 : vector<2048x128xf32> to vector<8x256x128xf32>
    %cst_8 = arith.constant dense<0.000000e+00> : vector<8x128xf32>
    %11 = vector.multi_reduction <add>, %10, %cst_8 [1] : vector<8x256x128xf32> to vector<8x128xf32>
    %cst_9 = arith.constant 2.560000e+02 : f32
    %12 = vector.broadcast %cst_9 : f32 to vector<8x128xf32>
    %13 = arith.divf %11, %12 : vector<8x128xf32>
    %14 = arith.truncf %13 : vector<8x128xf32> to vector<8x128xbf16>
    %c0_10 = arith.constant 0 : index
    %c0_11 = arith.constant 0 : index
    %15 = vector.load %arg5[%c0_10, %c0_11] : memref<128x128xbf16, #tpu.memory_space<vmem>>, vector<128x128xbf16>
    %cst_12 = arith.constant dense<0.000000e+00> : vector<8x128xf32>
    %16 = tpu.matmul %14, %15, %cst_12 {dimension_numbers = #tpu.dot_dimension_numbers<[1], [0], [0], [1], [0, 0, 1, 1], [], []>} : vector<8x128xbf16>, vector<128x128xbf16>, vector<8x128xf32> -> vector<8x128xf32>
    %c0_13 = arith.constant 0 : index
    %c0_14 = arith.constant 0 : index
    %17 = vector.load %arg6[%c0_13, %c0_14] : memref<1x128xf32, #tpu.memory_space<vmem>>, vector<1x128xf32>
    %18 = vector.broadcast %17 : vector<1x128xf32> to vector<8x128xf32>
    %19 = arith.addf %16, %18 : vector<8x128xf32>
    %cst_15 = arith.constant 0.000000e+00 : f32
    %20 = vector.broadcast %cst_15 : f32 to vector<8x128xf32>
    %21 = arith.maximumf %19, %20 : vector<8x128xf32>
    %22 = arith.truncf %21 : vector<8x128xf32> to vector<8x128xbf16>
    %c0_16 = arith.constant 0 : index
    %c0_17 = arith.constant 0 : index
    %23 = vector.load %arg7[%c0_16, %c0_17] : memref<128x128xbf16, #tpu.memory_space<vmem>>, vector<128x128xbf16>
    %cst_18 = arith.constant dense<0.000000e+00> : vector<8x128xf32>
    %24 = tpu.matmul %22, %23, %cst_18 {dimension_numbers = #tpu.dot_dimension_numbers<[1], [0], [0], [1], [0, 0, 1, 1], [], []>} : vector<8x128xbf16>, vector<128x128xbf16>, vector<8x128xf32> -> vector<8x128xf32>
    %c0_19 = arith.constant 0 : index
    %c0_20 = arith.constant 0 : index
    %25 = vector.load %arg8[%c0_19, %c0_20] : memref<1x128xf32, #tpu.memory_space<vmem>>, vector<1x128xf32>
    %26 = vector.broadcast %25 : vector<1x128xf32> to vector<8x128xf32>
    %27 = arith.addf %24, %26 : vector<8x128xf32>
    %28 = arith.mulf %27, %27 : vector<8x128xf32>
    %cst_21 = arith.constant dense<0.000000e+00> : vector<8xf32>
    %29 = vector.multi_reduction <add>, %28, %cst_21 [1] : vector<8x128xf32> to vector<8xf32>
    %30 = vector.shape_cast %29 : vector<8xf32> to vector<8x1xf32>
    %cst_22 = arith.constant 1.000000e-24 : f32
    %31 = vector.broadcast %cst_22 : f32 to vector<8x1xf32>
    %32 = arith.maximumf %30, %31 : vector<8x1xf32>
    %33 = math.rsqrt %32 : vector<8x1xf32>
    %34 = vector.broadcast %33 : vector<8x1xf32> to vector<8x128xf32>
    %35 = arith.mulf %27, %34 : vector<8x128xf32>
    %c0_23 = arith.constant 0 : index
    %c0_24 = arith.constant 0 : index
    %36 = vector.load %arg9[%c0_23, %c0_24] : memref<8x128xf32, #tpu.memory_space<vmem>>, vector<8x128xf32>
    tpu.vector_store %arg9[%c0_23, %c0_24], %35 {strides = array<i32>} : memref<8x128xf32, #tpu.memory_space<vmem>>, vector<8x128xf32>,
    return
  }
  func.func @transform_0(%arg0: i32, %arg1: i32) -> (i32, i32, i32, i32) {
    %c0_i32 = arith.constant 0 : i32
    %c0_i32_0 = arith.constant 0 : i32
    %c0_i32_1 = arith.constant 0 : i32
    return %arg0, %arg1, %c0_i32, %c0_i32_0 : i32, i32, i32, i32
  }
  func.func @transform_1(%arg0: i32, %arg1: i32) -> (i32, i32) {
    %c0_i32 = arith.constant 0 : i32
    %c0_i32_0 = arith.constant 0 : i32
    %c0_i32_1 = arith.constant 0 : i32
    return %c0_i32, %c0_i32_0 : i32, i32
  }
  func.func @transform_2(%arg0: i32, %arg1: i32) -> (i32, i32) {
    %c0_i32 = arith.constant 0 : i32
    %c0_i32_0 = arith.constant 0 : i32
    %c0_i32_1 = arith.constant 0 : i32
    return %c0_i32, %c0_i32_0 : i32, i32
  }
  func.func @transform_3(%arg0: i32, %arg1: i32) -> (i32, i32) {
    %c0_i32 = arith.constant 0 : i32
    %c0_i32_0 = arith.constant 0 : i32
    %c0_i32_1 = arith.constant 0 : i32
    return %c0_i32, %c0_i32_0 : i32, i32
  }
  func.func @transform_4(%arg0: i32, %arg1: i32) -> (i32, i32) {
    %c0_i32 = arith.constant 0 : i32
    %c0_i32_0 = arith.constant 0 : i32
    %c0_i32_1 = arith.constant 0 : i32
    return %c0_i32, %c0_i32_0 : i32, i32
  }
  func.func @transform_5(%arg0: i32, %arg1: i32) -> (i32, i32) {
    %c0_i32 = arith.constant 0 : i32
    %c0_i32_0 = arith.constant 0 : i32
    %c0_i32_1 = arith.constant 0 : i32
    return %c0_i32, %c0_i32_0 : i32, i32
  }
  func.func @transform_6(%arg0: i32, %arg1: i32) -> (i32, i32) {
    %c0_i32 = arith.constant 0 : i32
    %c0_i32_0 = arith.constant 0 : i32
    %c0_i32_1 = arith.constant 0 : i32
    return %c0_i32, %c0_i32_0 : i32, i32
  }
  func.func @transform_7(%arg0: i32, %arg1: i32) -> (i32, i32) {
    %c0_i32 = arith.constant 0 : i32
    return %arg1, %arg0 : i32, i32
  }
}

</mosaic_0001>

<bundles_post_ra>
// kernel: simclr_forward.1
= control target key start
LH: loop header
LB: loop body
LE: loop exit
PB: predicated region body
PF: predicated region fallthrough
CT: control target
= control target key end

     0   :  { %s4285_s24 = smov 0   ;;  %s4287_s25 = smov 0   ;;  %s4909_s0 = inlined_call_operand.vmem [shape: bf16[2,8,256,128], index: 0, kind: input, shape index: {}]   ;;  %s4910_s1 = inlined_call_operand.vmem [shape: bf16[128,128], index: 1, kind: input, shape index: {}]   ;;  %s4911_s2 = inlined_call_operand.vmem [shape: f32[1,128], index: 2, kind: input, shape index: {}]   ;;  %s4912_s3 = inlined_call_operand.vmem [shape: bf16[128,128], index: 3, kind: input, shape index: {}]   ;;  %s4913_s4 = inlined_call_operand.vmem [shape: f32[1,128], index: 4, kind: input, shape index: {}]   ;;  %s4914_s5 = inlined_call_operand.vmem [shape: bf16[128,128], index: 5, kind: input, shape index: {}]   ;;  %s4915_s6 = inlined_call_operand.vmem [shape: f32[1,128], index: 6, kind: input, shape index: {}]   ;;  %s4916_s7 = inlined_call_operand.vmem [shape: f32[8,256], index: 7, kind: output, shape index: {}]  }
   0x1   :  { %s4289_s26 = smov 0  }
   0x2 LB: > { %s29_s27 = sadd.s32 1, %s4237_s25  ;;  %p3393_p0 = scmp.ge.s32.totalorder %s4241_s26, 1  ;;  %s4241_s26 = sphi %s4289_s26, %s17_s26   ;;  %s4237_s25 = sphi %s4287_s25, %s4918_s25   ;;  %s4233_s24 = sphi %s4285_s24, %s4917_s24  }
   0x3   : > { %p31_p1 = scmp.ge.s32.totalorder %s29_s27, 2  ;;  %p259_p2 = scmp.lt.s32.totalorder %s4241_s26, 3 }
   0x5   : > { %s4920_s27 = smov (%p31_p1, %s29_s27), 0  ;;  %p260_p3 = pnand %p3393_p0, %p259_p2 }
   0x6   : > { %p300_p4 = scmp.lt.s32.totalorder (!%p260_p3), %s4233_s24, 1 }
   0x7   : > { %263 = sbr.rel (%p260_p3) target bundleno = 1143 (0x477), region = 48 }
   0xc   : > { %v4063_v0 = vld [vmem:[%s4910_s1 + $0x38] sm:$0xff]   ;;  %v4064_v1 = vld [vmem:[%s4910_s1 + $0x30] sm:$0xff]   ;;  %s4922_s24 = smov (!%p300_p4, %s4233_s24), 1  ;;  %v4065_v2 = vld [vmem:[%s4910_s1 + $0x28] sm:$0xff]   ;;  %vm3079_vm0 = vcmask 1041409   ;;  %vm4244_vm1 = vmmov 0  }
   0xd   : > { %3709 = vmatprep.subr.bf16.mxu0 %v4063_v0  ;;  %4021 = vmatprep.subr.bf16.mxu1 %v4063_v0  ;;  %s3554_s11 = sshll.u32 %s4922_s24, 10  ;;  %v4066_v3 = vld [vmem:[%s4910_s1 + $0x20] sm:$0xff]   ;;  %v4067_v5 = vld [vmem:[%s4910_s1 + $0x18] sm:$0xff]   ;;  %v4068_v6 = vld [vmem:[%s4910_s1 + $0x10] sm:$0xff]   ;;  %vm3081_vm2 = vcmask 1042434   ;;  %vm3083_vm3 = vcmask 1043459  }
   0xe   : > { %3710 = vmatpush3.bf16.msra.mxu0 %v4063_v0  ;;  %4029 = vmatpush3.bf16.msra.mxu1 %v4063_v0  ;;  %s4318_s14 = scalar_lea.vmem %s4909_s0, %s3554_s11  ;;  %v4069_v7 = vld [vmem:[%s4910_s1 + $0x8] sm:$0xff]   ;;  %v4070_v8 = vld [vmem:[%s4910_s1] sm:$0xff]   ;;  %vm3085_vm4 = vcmask 1044484   ;;  %vm3087_vm5 = vcmask 1045509   ;;  %vm3089_vm6 = vcmask 1046534   ;;  %vm3091_vm7 = vcmask 1047559  }
   0xf   : > { %3711 = vmatprep.subr.bf16.mxu0 %v4064_v1  ;;  %4022 = vmatprep.subr.bf16.mxu1 %v4064_v1  ;;  %v4071_v4 = vld [vmem:[%s4318_s14] sm:$0xff]   ;;  %v4091_v9 = vld [vmem:[%s4318_s14 + $0x230] sm:$0xff]   ;;  %v4072_v10 = vld [vmem:[%s4318_s14 + $0x8] sm:$0xff]   ;;  %s3396_s10 = sshll.u32 %s4922_s24, 3 }
  0x10   : > { %3725 = vmatprep.mubr.bf16.mxu0 %v4071_v4  ;;  %3865 = vmatprep.mubr.bf16.mxu1 %v4091_v9  ;;  %v4092_v11 = vld [vmem:[%s4318_s14 + $0x238] sm:$0xff]   ;;  %v4073_v12 = vld [vmem:[%s4318_s14 + $0x10] sm:$0xff]   ;;  %v4095_v13 = vld [vmem:[%s4318_s14 + $0x240] sm:$0xff]   ;;  %s317_s13 = scalar_lea.vmem %s4916_s7, %s3396_s10 }
  0x11   : > { %v4074_v14 = vld [vmem:[%s4318_s14 + $0x18] sm:$0xff]   ;;  %v4075_v15 = vld [vmem:[%s4318_s14 + $0x20] sm:$0xff]   ;;  %v4096_v16 = vld [vmem:[%s4318_s14 + $0x248] sm:$0xff]  }
  0x12   : > { %3712 = vmatpush3.bf16.msra.mxu0 %v4064_v1  ;;  %4030 = vmatpush3.bf16.msra.mxu1 %v4064_v1  ;;  %v4099_v17 = vld [vmem:[%s4318_s14 + $0x250] sm:$0xff]   ;;  %v4076_v18 = vld [vmem:[%s4318_s14 + $0x28] sm:$0xff]   ;;  %v4100_v20 = vld [vmem:[%s4318_s14 + $0x258] sm:$0xff]  }
  0x13   : > { %3713 = vmatprep.subr.bf16.mxu0 %v4065_v2  ;;  %4023 = vmatprep.subr.bf16.mxu1 %v4065_v2  ;;  %v4077_v19 = vld [vmem:[%s4318_s14 + $0x30] sm:$0xff]   ;;  %v4103_v21 = vld [vmem:[%s4318_s14 + $0x260] sm:$0xff]   ;;  %v4078_v22 = vld [vmem:[%s4318_s14 + $0x38] sm:$0xff]  }
  0x14   : > { %v4079_v23 = vld [vmem:[%s4318_s14 + $0x40] sm:$0xff]   ;;  %v4104_v24 = vld [vmem:[%s4318_s14 + $0x268] sm:$0xff]   ;;  %v4107_v25 = vld [vmem:[%s4318_s14 + $0x270] sm:$0xff]  }
  0x15   : > { %v4080_v26 = vld [vmem:[%s4318_s14 + $0x48] sm:$0xff]   ;;  %v4081_v27 = vld [vmem:[%s4318_s14 + $0x50] sm:$0xff]   ;;  %v4108_v28 = vld [vmem:[%s4318_s14 + $0x278] sm:$0xff]  }
  0x16   : > { %3714 = vmatpush3.bf16.msra.mxu0 %v4065_v2  ;;  %4031 = vmatpush3.bf16.msra.mxu1 %v4065_v2  ;;  %v4111_v29 = vld [vmem:[%s4318_s14 + $0x280] sm:$0xff]   ;;  %v4082_v30 = vld [vmem:[%s4318_s14 + $0x58] sm:$0xff]   ;;  %v4112_v32 = vld [vmem:[%s4318_s14 + $0x288] sm:$0xff]  }
  0x17   : > { %3715 = vmatprep.subr.bf16.mxu0 %v4066_v3  ;;  %4024 = vmatprep.subr.bf16.mxu1 %v4066_v3  ;;  %v4083_v31 = vld [vmem:[%s4318_s14 + $0x60] sm:$0xff]   ;;  %v4115_v33 = vld [vmem:[%s4318_s14 + $0x290] sm:$0xff]   ;;  %v4084_v34 = vld [vmem:[%s4318_s14 + $0x68] sm:$0xff]  }
  0x18   : > { %v4085_v35 = vld [vmem:[%s4318_s14 + $0x70] sm:$0xff]   ;;  %v4116_v36 = vld [vmem:[%s4318_s14 + $0x298] sm:$0xff]   ;;  %v4119_v37 = vld [vmem:[%s4318_s14 + $0x2a0] sm:$0xff]  }
  0x19   : > { %v4086_v38 = vld [vmem:[%s4318_s14 + $0x78] sm:$0xff]   ;;  %v4120_v39 = vld [vmem:[%s4318_s14 + $0x2a8] sm:$0xff]   ;;  %v4087_v40 = vld [vmem:[%s4318_s14 + $0x80] sm:$0xff]  }
  0x1a   : > { %3716 = vmatpush3.bf16.msra.mxu0 %v4066_v3  ;;  %4032 = vmatpush3.bf16.msra.mxu1 %v4066_v3  ;;  %v4123_v41 = vld [vmem:[%s4318_s14 + $0x2b0] sm:$0xff]   ;;  %v4088_v42 = vld [vmem:[%s4318_s14 + $0x88] sm:$0xff]   ;;  %v4124_v43 = vld [vmem:[%s4318_s14 + $0x2b8] sm:$0xff]  }
  0x1b   : > { %3717 = vmatprep.subr.bf16.mxu0 %v4067_v5  ;;  %4025 = vmatprep.subr.bf16.mxu1 %v4067_v5  ;;  %v4089_v44 = vld [vmem:[%s4318_s14 + $0x90] sm:$0xff]   ;;  %v4127_v45 = vld [vmem:[%s4318_s14 + $0x2c0] sm:$0xff]   ;;  %v4090_v46 = vld [vmem:[%s4318_s14 + $0x98] sm:$0xff]  }
  0x1c   : > { %v4128_v47 = vld [vmem:[%s4318_s14 + $0x2c8] sm:$0xff]   ;;  %v4093_v48 = vld [vmem:[%s4318_s14 + $0xa0] sm:$0xff]   ;;  %v4131_v49 = vld [vmem:[%s4318_s14 + $0x2d0] sm:$0xff]  }
  0x1d   : > { %v4094_v50 = vld [vmem:[%s4318_s14 + $0xa8] sm:$0xff]   ;;  %v4132_v51 = vld [vmem:[%s4318_s14 + $0x2d8] sm:$0xff]   ;;  %v4097_v52 = vld [vmem:[%s4318_s14 + $0xb0] sm:$0xff]  }
  0x1e   : > { %3718 = vmatpush3.bf16.msra.mxu0 %v4067_v5  ;;  %4033 = vmatpush3.bf16.msra.mxu1 %v4067_v5  ;;  %v4135_v53 = vld [vmem:[%s4318_s14 + $0x2e0] sm:$0xff]   ;;  %v4098_v54 = vld [vmem:[%s4318_s14 + $0xb8] sm:$0xff]   ;;  %v4136_v55 = vld [vmem:[%s4318_s14 + $0x2e8] sm:$0xff]  }
  0x1f   : > { %3719 = vmatprep.subr.bf16.mxu0 %v4068_v6  ;;  %4026 = vmatprep.subr.bf16.mxu1 %v4068_v6  ;;  %v4101_v56 = vld [vmem:[%s4318_s14 + $0xc0] sm:$0xff]   ;;  %v4139_v57 = vld [vmem:[%s4318_s14 + $0x2f0] sm:$0xff]   ;;  %v4102_v58 = vld [vmem:[%s4318_s14 + $0xc8] sm:$0xff]  }
  0x20   : > { %v4140_v59 = vld [vmem:[%s4318_s14 + $0x2f8] sm:$0xff]   ;;  %v4105_v60 = vld [vmem:[%s4318_s14 + $0xd0] sm:$0xff]   ;;  %v4143_v61 = vld [vmem:[%s4318_s14 + $0x300] sm:$0xff]  }
  0x21   : > { %v4106_v62 = vld [vmem:[%s4318_s14 + $0xd8] sm:$0xff]   ;;  %v4144_v63 = vld [vmem:[%s4318_s14 + $0x308] sm:$0xff]   ;;  %v4109_v0 = vld [vmem:[%s4318_s14 + $0xe0] sm:$0xff]  }
  0x22   : > { %3720 = vmatpush3.bf16.msra.mxu0 %v4068_v6  ;;  %4034 = vmatpush3.bf16.msra.mxu1 %v4068_v6  ;;  %v4147_v1 = vld [vmem:[%s4318_s14 + $0x310] sm:$0xff]   ;;  %v4110_v2 = vld [vmem:[%s4318_s14 + $0xe8] sm:$0xff]   ;;  %v4148_v3 = vld [vmem:[%s4318_s14 + $0x318] sm:$0xff]  }
  0x23   : > { %3721 = vmatprep.subr.bf16.mxu0 %v4069_v7  ;;  %4027 = vmatprep.subr.bf16.mxu1 %v4069_v7  ;;  %v4113_v4 = vld [vmem:[%s4318_s14 + $0xf0] sm:$0xff]   ;;  %v4151_v5 = vld [vmem:[%s4318_s14 + $0x320] sm:$0xff]   ;;  %v4114_v6 = vld [vmem:[%s4318_s14 + $0xf8] sm:$0xff]  }
  0x24   : > { %v4155_v9 = vld [vmem:[%s4318_s14 + $0x330] sm:$0xff]  }
  0x26   : > { %3722 = vmatpush3.bf16.msra.mxu0 %v4069_v7  ;;  %4035 = vmatpush3.bf16.msra.mxu1 %v4069_v7  ;;  %v4152_v7 = vld [vmem:[%s4318_s14 + $0x328] sm:$0xff]  }
  0x27   : > { %3723 = vmatprep.subr.bf16.mxu0 %v4070_v8  ;;  %4028 = vmatprep.subr.bf16.mxu1 %v4070_v8 }
  0x2a   : > { %3724 = vmatpush3.bf16.msra.mxu0 %v4070_v8  ;;  %4036 = vmatpush3.bf16.msra.mxu1 %v4070_v8  ;;  %v4117_v8 = vld [vmem:[%s4318_s14 + $0x100] sm:$0xff]  }
  0x2d   : > { %3726 = vmatmul.mubr.bf16.vlgmr.msra.gmra.mxu0 %v4072_v10  ;;  %3866 = vmatmul.mubr.bf16.vlgmr.msra.gmra.mxu1 %v4092_v11  ;;  %v4118_v10 = vld [vmem:[%s4318_s14 + $0x108] sm:$0xff]   ;;  %v4156_v11 = vld [vmem:[%s4318_s14 + $0x338] sm:$0xff]  }
  0x2e   : > { %3729 = vmatprep.mubr.bf16.mxu0 %v4073_v12  ;;  %3869 = vmatprep.mubr.bf16.mxu1 %v4095_v13  ;;  %v4121_v12 = vld [vmem:[%s4318_s14 + $0x110] sm:$0xff]   ;;  %v4159_v13 = vld [vmem:[%s4318_s14 + $0x340] sm:$0xff]  }
  0x35   : > { %3730 = vmatmul.mubr.bf16.gmra.mxu0 %v4074_v14  ;;  %3870 = vmatmul.mubr.bf16.gmra.mxu1 %v4096_v16  ;;  %v4122_v14 = vld [vmem:[%s4318_s14 + $0x118] sm:$0xff]   ;;  %v4125_v16 = vld [vmem:[%s4318_s14 + $0x120] sm:$0xff]  }
  0x36   : > { %3733 = vmatprep.mubr.bf16.mxu0 %v4075_v15  ;;  %3873 = vmatprep.mubr.bf16.mxu1 %v4099_v17  ;;  %v4160_v15 = vld [vmem:[%s4318_s14 + $0x348] sm:$0xff]   ;;  %v4163_v17 = vld [vmem:[%s4318_s14 + $0x350] sm:$0xff]  }
  0x3d   : > { %3734 = vmatmul.mubr.bf16.gmra.mxu0 %v4076_v18  ;;  %3874 = vmatmul.mubr.bf16.gmra.mxu1 %v4100_v20  ;;  %v4126_v18 = vld [vmem:[%s4318_s14 + $0x128] sm:$0xff]   ;;  %v4129_v20 = vld [vmem:[%s4318_s14 + $0x130] sm:$0xff]  }
  0x3e   : > { %3737 = vmatprep.mubr.bf16.mxu0 %v4077_v19  ;;  %3877 = vmatprep.mubr.bf16.mxu1 %v4103_v21  ;;  %v4164_v19 = vld [vmem:[%s4318_s14 + $0x358] sm:$0xff]   ;;  %v4167_v21 = vld [vmem:[%s4318_s14 + $0x360] sm:$0xff]  }
  0x45   : > { %3738 = vmatmul.mubr.bf16.gmra.mxu0 %v4078_v22  ;;  %3878 = vmatmul.mubr.bf16.gmra.mxu1 %v4104_v24  ;;  %v4130_v22 = vld [vmem:[%s4318_s14 + $0x138] sm:$0xff]   ;;  %v4133_v24 = vld [vmem:[%s4318_s14 + $0x140] sm:$0xff]  }
  0x46   : > { %3741 = vmatprep.mubr.bf16.mxu0 %v4079_v23  ;;  %3881 = vmatprep.mubr.bf16.mxu1 %v4107_v25  ;;  %v4168_v23 = vld [vmem:[%s4318_s14 + $0x368] sm:$0xff]   ;;  %v4171_v25 = vld [vmem:[%s4318_s14 + $0x370] sm:$0xff]  }
  0x4d   : > { %3742 = vmatmul.mubr.bf16.gmra.mxu0 %v4080_v26  ;;  %3882 = vmatmul.mubr.bf16.gmra.mxu1 %v4108_v28  ;;  %v4134_v26 = vld [vmem:[%s4318_s14 + $0x148] sm:$0xff]   ;;  %v4137_v28 = vld [vmem:[%s4318_s14 + $0x150] sm:$0xff]  }
  0x4e   : > { %3745 = vmatprep.mubr.bf16.mxu0 %v4081_v27  ;;  %3885 = vmatprep.mubr.bf16.mxu1 %v4111_v29  ;;  %v4172_v27 = vld [vmem:[%s4318_s14 + $0x378] sm:$0xff]   ;;  %v4175_v29 = vld [vmem:[%s4318_s14 + $0x380] sm:$0xff]  }
  0x55   : > { %3746 = vmatmul.mubr.bf16.gmra.mxu0 %v4082_v30  ;;  %3886 = vmatmul.mubr.bf16.gmra.mxu1 %v4112_v32  ;;  %v4138_v30 = vld [vmem:[%s4318_s14 + $0x158] sm:$0xff]   ;;  %v4141_v32 = vld [vmem:[%s4318_s14 + $0x160] sm:$0xff]  }
  0x56   : > { %3749 = vmatprep.mubr.bf16.mxu0 %v4083_v31  ;;  %3889 = vmatprep.mubr.bf16.mxu1 %v4115_v33  ;;  %v4176_v31 = vld [vmem:[%s4318_s14 + $0x388] sm:$0xff]   ;;  %v4179_v33 = vld [vmem:[%s4318_s14 + $0x390] sm:$0xff]  }
  0x5d   : > { %3750 = vmatmul.mubr.bf16.gmra.mxu0 %v4084_v34  ;;  %3890 = vmatmul.mubr.bf16.gmra.mxu1 %v4116_v36  ;;  %v4142_v34 = vld [vmem:[%s4318_s14 + $0x168] sm:$0xff]   ;;  %v4145_v36 = vld [vmem:[%s4318_s14 + $0x170] sm:$0xff]  }
  0x5e   : > { %3753 = vmatprep.mubr.bf16.mxu0 %v4085_v35  ;;  %3893 = vmatprep.mubr.bf16.mxu1 %v4119_v37  ;;  %v4180_v35 = vld [vmem:[%s4318_s14 + $0x398] sm:$0xff]   ;;  %v4183_v37 = vld [vmem:[%s4318_s14 + $0x3a0] sm:$0xff]  }
  0x65   : > { %3754 = vmatmul.mubr.bf16.gmra.mxu0 %v4086_v38  ;;  %3894 = vmatmul.mubr.bf16.gmra.mxu1 %v4120_v39  ;;  %v4146_v38 = vld [vmem:[%s4318_s14 + $0x178] sm:$0xff]   ;;  %v4184_v39 = vld [vmem:[%s4318_s14 + $0x3a8] sm:$0xff]  }
  0x66   : > { %3757 = vmatprep.mubr.bf16.mxu0 %v4087_v40  ;;  %3897 = vmatprep.mubr.bf16.mxu1 %v4123_v41  ;;  %v4149_v40 = vld [vmem:[%s4318_s14 + $0x180] sm:$0xff]   ;;  %v4187_v41 = vld [vmem:[%s4318_s14 + $0x3b0] sm:$0xff]  }
  0x6d   : > { %3758 = vmatmul.mubr.bf16.gmra.mxu0 %v4088_v42  ;;  %3898 = vmatmul.mubr.bf16.gmra.mxu1 %v4124_v43  ;;  %v4150_v42 = vld [vmem:[%s4318_s14 + $0x188] sm:$0xff]   ;;  %v4188_v43 = vld [vmem:[%s4318_s14 + $0x3b8] sm:$0xff]  }
  0x6e   : > { %3761 = vmatprep.mubr.bf16.mxu0 %v4089_v44  ;;  %3901 = vmatprep.mubr.bf16.mxu1 %v4127_v45  ;;  %v4153_v44 = vld [vmem:[%s4318_s14 + $0x190] sm:$0xff]   ;;  %v4191_v45 = vld [vmem:[%s4318_s14 + $0x3c0] sm:$0xff]  }
  0x75   : > { %3762 = vmatmul.mubr.bf16.gmra.mxu0 %v4090_v46  ;;  %3902 = vmatmul.mubr.bf16.gmra.mxu1 %v4128_v47  ;;  %v4199_v46 = vld [vmem:[%s4912_s3 + $0x38] sm:$0xff]   ;;  %v4243_v47 = vmov 0.0  }
  0x76   : > { %3765 = vmatprep.mubr.bf16.mxu0 %v4093_v48  ;;  %3905 = vmatprep.mubr.bf16.mxu1 %v4131_v49 }
  0x77   : > { %3981 = vmatprep.subr.bf16.mxu1 %v4243_v47 }
  0x78   : > { %3982 = vmatpush3.bf16.msra.mxu1 %v4199_v46 }
  0x79   : > { %3983 = vmatprep.subr.bf16.mxu1 %v4243_v47 }
  0x7d   : > { %3766 = vmatmul.mubr.bf16.gmra.mxu0 %v4094_v50  ;;  %3906 = vmatmul.mubr.bf16.gmra.mxu1 %v4132_v51 }
  0x7e   : > { %3769 = vmatprep.mubr.bf16.mxu0 %v4097_v52  ;;  %3909 = vmatprep.mubr.bf16.mxu1 %v4135_v53  ;;  %v4449_v52 = vld [vmem:[%s4911_s2] ss:$0 sm:$0xff] }
  0x85   : > { %3770 = vmatmul.mubr.bf16.gmra.mxu0 %v4098_v54  ;;  %3910 = vmatmul.mubr.bf16.gmra.mxu1 %v4136_v55  ;;  %v4154_v54 = vld [vmem:[%s4318_s14 + $0x198] sm:$0xff]  }
  0x86   : > { %3773 = vmatprep.mubr.bf16.mxu0 %v4101_v56  ;;  %3913 = vmatprep.mubr.bf16.mxu1 %v4139_v57  ;;  %v4192_v56 = vld [vmem:[%s4318_s14 + $0x3c8] sm:$0xff]  }
  0x8d   : > { %3774 = vmatmul.mubr.bf16.gmra.mxu0 %v4102_v58  ;;  %3914 = vmatmul.mubr.bf16.gmra.mxu1 %v4140_v59  ;;  %v4157_v58 = vld [vmem:[%s4318_s14 + $0x1a0] sm:$0xff]   ;;  %v4193_v59 = vld [vmem:[%s4318_s14 + $0x3d0] sm:$0xff]  }
  0x8e   : > { %3777 = vmatprep.mubr.bf16.mxu0 %v4105_v60  ;;  %3917 = vmatprep.mubr.bf16.mxu1 %v4143_v61 }
  0x95   : > { %3778 = vmatmul.mubr.bf16.gmra.mxu0 %v4106_v62  ;;  %3918 = vmatmul.mubr.bf16.gmra.mxu1 %v4144_v63 }
  0x96   : > { %3781 = vmatprep.mubr.bf16.mxu0 %v4109_v0  ;;  %3921 = vmatprep.mubr.bf16.mxu1 %v4147_v1 }
  0x9d   : > { %3782 = vmatmul.mubr.bf16.gmra.mxu0 %v4110_v2  ;;  %3922 = vmatmul.mubr.bf16.gmra.mxu1 %v4148_v3 }
  0x9e   : > { %3785 = vmatprep.mubr.bf16.mxu0 %v4113_v4  ;;  %3925 = vmatprep.mubr.bf16.mxu1 %v4151_v5 }
  0xa5   : > { %3786 = vmatmul.mubr.bf16.gmra.mxu0 %v4114_v6  ;;  %3926 = vmatmul.mubr.bf16.gmra.mxu1 %v4152_v7 }
  0xa6   : > { %3789 = vmatprep.mubr.bf16.mxu0 %v4117_v8  ;;  %3929 = vmatprep.mubr.bf16.mxu1 %v4155_v9 }
  0xad   : > { %3790 = vmatmul.mubr.bf16.gmra.mxu0 %v4118_v10  ;;  %3930 = vmatmul.mubr.bf16.gmra.mxu1 %v4156_v11  ;;  %v4158_v11 = vld [vmem:[%s4318_s14 + $0x1a8] sm:$0xff]  }
  0xae   : > { %3793 = vmatprep.mubr.bf16.mxu0 %v4121_v12  ;;  %3933 = vmatprep.mubr.bf16.mxu1 %v4159_v13  ;;  %v4194_v13 = vld [vmem:[%s4318_s14 + $0x3d8] sm:$0xff]  }
  0xb5   : > { %3794 = vmatmul.mubr.bf16.gmra.mxu0 %v4122_v14  ;;  %3934 = vmatmul.mubr.bf16.gmra.mxu1 %v4160_v15 }
  0xb6   : > { %3797 = vmatprep.mubr.bf16.mxu0 %v4125_v16  ;;  %3937 = vmatprep.mubr.bf16.mxu1 %v4163_v17  ;;  %v4161_v16 = vld [vmem:[%s4318_s14 + $0x1b0] sm:$0xff]   ;;  %v4195_v17 = vld [vmem:[%s4318_s14 + $0x3e0] sm:$0xff]  }
  0xbd   : > { %3798 = vmatmul.mubr.bf16.gmra.mxu0 %v4126_v18  ;;  %3938 = vmatmul.mubr.bf16.gmra.mxu1 %v4164_v19 }
  0xbe   : > { %3801 = vmatprep.mubr.bf16.mxu0 %v4129_v20  ;;  %3941 = vmatprep.mubr.bf16.mxu1 %v4167_v21 }
  0xc5   : > { %3802 = vmatmul.mubr.bf16.gmra.mxu0 %v4130_v22  ;;  %3942 = vmatmul.mubr.bf16.gmra.mxu1 %v4168_v23 }
  0xc6   : > { %3805 = vmatprep.mubr.bf16.mxu0 %v4133_v24  ;;  %3945 = vmatprep.mubr.bf16.mxu1 %v4171_v25 }
  0xcd   : > { %3806 = vmatmul.mubr.bf16.gmra.mxu0 %v4134_v26  ;;  %3946 = vmatmul.mubr.bf16.gmra.mxu1 %v4172_v27 }
  0xce   : > { %3809 = vmatprep.mubr.bf16.mxu0 %v4137_v28  ;;  %3949 = vmatprep.mubr.bf16.mxu1 %v4175_v29 }
  0xd5   : > { %3810 = vmatmul.mubr.bf16.gmra.mxu0 %v4138_v30  ;;  %3950 = vmatmul.mubr.bf16.gmra.mxu1 %v4176_v31 }
  0xd6   : > { %3813 = vmatprep.mubr.bf16.mxu0 %v4141_v32  ;;  %3953 = vmatprep.mubr.bf16.mxu1 %v4179_v33 }
  0xdd   : > { %3814 = vmatmul.mubr.bf16.gmra.mxu0 %v4142_v34  ;;  %3954 = vmatmul.mubr.bf16.gmra.mxu1 %v4180_v35  ;;  %v4162_v35 = vld [vmem:[%s4318_s14 + $0x1b8] sm:$0xff]  }
  0xde   : > { %3817 = vmatprep.mubr.bf16.mxu0 %v4145_v36  ;;  %3957 = vmatprep.mubr.bf16.mxu1 %v4183_v37  ;;  %v4196_v37 = vld [vmem:[%s4318_s14 + $0x3e8] sm:$0xff]  }
  0xe5   : > { %3818 = vmatmul.mubr.bf16.gmra.mxu0 %v4146_v38  ;;  %3958 = vmatmul.mubr.bf16.gmra.mxu1 %v4184_v39 }
  0xe6   : > { %3821 = vmatprep.mubr.bf16.mxu0 %v4149_v40  ;;  %3961 = vmatprep.mubr.bf16.mxu1 %v4187_v41  ;;  %v4165_v40 = vld [vmem:[%s4318_s14 + $0x1c0] sm:$0xff]   ;;  %v4197_v41 = vld [vmem:[%s4318_s14 + $0x3f0] sm:$0xff]  }
  0xed   : > { %v3727_v48 = vpop.f32.mrf.mxu0  ;;  %3822 = vmatmul.mubr.bf16.gmra.mxu0 %v4150_v42  ;;  %v4441_v49 = vpop.f32.mrf.mxu1  ;;  %3962 = vmatmul.mubr.bf16.gmra.mxu1 %v4188_v43 }
  0xee   : > { %3825 = vmatprep.mubr.bf16.mxu0 %v4153_v44  ;;  %3965 = vmatprep.mubr.bf16.mxu1 %v4191_v45  ;;  %v1457_v62 = vadd.f32 %v3727_v48, %v4449_v52 }
  0xef   : > { %v1448_v50 = vpop.f32.mrf.mxu0  ;;  %v4443_v51 = vpop.f32.mrf.mxu1 }
  0xf0   : > { %v1449_v57 = vadd.f32 %v4449_v52, %v1448_v50  ;;  %v2473_v7 = vmax.f32 %v1457_v62, 0.0 }
  0xf1   : > { %v3728_v53 = vpop.f32.mrf.mxu0  ;;  %v4452_v55 = vpop.f32.mrf.mxu1 }
  0xf2   : > { %v2471_v2 = vmax.f32 %v1449_v57, 0.0  ;;  %v1460_v3 = vadd.f32 %v3728_v53, %v4449_v52 }
  0xf3   : > { %v1451_v60 = vpop.f32.mrf.mxu0  ;;  %v4458_v61 = vpop.f32.mrf.mxu1 }
  0xf4   : > { %v1452_v63 = vadd.f32 %v4449_v52, %v1451_v60  ;;  %v2474_v14 = vmax.f32 %v1460_v3, 0.0 }
  0xf5   : > { %v3731_v0 = vpop.f32.mrf.mxu0  ;;  %3826 = vmatmul.mubr.bf16.gmra.mxu0 %v4154_v54  ;;  %v4462_v1 = vpop.f32.mrf.mxu1  ;;  %3966 = vmatmul.mubr.bf16.gmra.mxu1 %v4192_v56 }
  0xf6   : > { %v2472_v4 = vmax.f32 %v1452_v63, 0.0  ;;  %3829 = vmatprep.mubr.bf16.mxu0 %v4157_v58  ;;  %3969 = vmatprep.mubr.bf16.mxu1 %v4193_v59  ;;  %v1473_v20 = vadd.f32 %v3731_v0, %v4449_v52 }
  0xf7   : > { %v1464_v5 = vpop.f32.mrf.mxu0  ;;  %v4465_v6 = vpop.f32.mrf.mxu1 }
  0xf8   : > { %v2727_v8 = vadd.f32 %v2472_v4, %v2471_v2  ;;  %v1465_v9 = vadd.f32 %v4449_v52, %v1464_v5  ;;  %v2477_v31 = vmax.f32 %v1473_v20, 0.0  ;;  %v4166_v2 = vld [vmem:[%s4318_s14 + $0x1c8] sm:$0xff]   ;;  %v4198_v4 = vld [vmem:[%s4318_s14 + $0x3f8] sm:$0xff]  }
  0xf9   : > { %v3732_v10 = vpop.f32.mrf.mxu0  ;;  %v4469_v12 = vpop.f32.mrf.mxu1 }
  0xfa   : > { %v2728_v15 = vadd.f32 %v2727_v8, %v2473_v7  ;;  %v2475_v21 = vmax.f32 %v1465_v9, 0.0  ;;  %v1476_v27 = vadd.f32 %v3732_v10, %v4449_v52  ;;  %v4169_v8 = vld [vmem:[%s4318_s14 + $0x1d0] sm:$0xff]  }
  0xfb   : > { %v1467_v18 = vpop.f32.mrf.mxu0  ;;  %v4474_v19 = vpop.f32.mrf.mxu1  ;;  %v4200_v9 = vld [vmem:[%s4912_s3 + $0x30] sm:$0xff]  }
  0xfc   : > { %v2729_v22 = vadd.f32 %v2728_v15, %v2474_v14  ;;  %v1468_v23 = vadd.f32 %v4449_v52, %v1467_v18  ;;  %v2478_v38 = vmax.f32 %v1476_v27, 0.0  ;;  %3984 = vmatpush3.bf16.msra.mxu1 %v4200_v9 }
  0xfd   : > { %v3735_v24 = vpop.f32.mrf.mxu0  ;;  %3830 = vmatmul.mubr.bf16.gmra.mxu0 %v4158_v11  ;;  %v4478_v25 = vpop.f32.mrf.mxu1  ;;  %3970 = vmatmul.mubr.bf16.gmra.mxu1 %v4194_v13 }
  0xfe   : > { %v2730_v26 = vadd.f32 %v2729_v22, %v2475_v21  ;;  %v2476_v28 = vmax.f32 %v1468_v23, 0.0  ;;  %3833 = vmatprep.mubr.bf16.mxu0 %v4161_v16  ;;  %3973 = vmatprep.mubr.bf16.mxu1 %v4195_v17  ;;  %v1489_v44 = vadd.f32 %v3735_v24, %v4449_v52 }
  0xff   : > { %v1480_v29 = vpop.f32.mrf.mxu0  ;;  %v4481_v30 = vpop.f32.mrf.mxu1  ;;  %3985 = vmatprep.subr.bf16.mxu1 %v4243_v47 }
 0x100   : > { %v2731_v32 = vadd.f32 %v2730_v26, %v2476_v28  ;;  %v1481_v33 = vadd.f32 %v4449_v52, %v1480_v29  ;;  %v2481_v60 = vmax.f32 %v1489_v44, 0.0 }
 0x101   : > { %v3736_v34 = vpop.f32.mrf.mxu0  ;;  %v4485_v36 = vpop.f32.mrf.mxu1 }
 0x102   : > { %v2732_v39 = vadd.f32 %v2731_v32, %v2477_v31  ;;  %v2479_v45 = vmax.f32 %v1481_v33, 0.0  ;;  %v1492_v56 = vadd.f32 %v3736_v34, %v4449_v52  ;;  %v4170_v31 = vld [vmem:[%s4318_s14 + $0x1d8] sm:$0xff]  }
 0x103   : > { %v1483_v42 = vpop.f32.mrf.mxu0  ;;  %v4490_v43 = vpop.f32.mrf.mxu1 }
 0x104   : > { %v2733_v46 = vadd.f32 %v2732_v39, %v2478_v38  ;;  %v1484_v48 = vadd.f32 %v4449_v52, %v1483_v42  ;;  %v2482_v5 = vmax.f32 %v1492_v56, 0.0 }
 0x105   : > { %v3739_v50 = vpop.f32.mrf.mxu0  ;;  %3834 = vmatmul.mubr.bf16.gmra.mxu0 %v4162_v35  ;;  %v4494_v53 = vpop.f32.mrf.mxu1  ;;  %3974 = vmatmul.mubr.bf16.gmra.mxu1 %v4196_v37  ;;  %v4173_v35 = vld [vmem:[%s4318_s14 + $0x1e0] sm:$0xff]  }
 0x106   : > { %v2734_v54 = vadd.f32 %v2733_v46, %v2479_v45  ;;  %v2480_v57 = vmax.f32 %v1484_v48, 0.0  ;;  %3837 = vmatprep.mubr.bf16.mxu0 %v4165_v40  ;;  %3977 = vmatprep.mubr.bf16.mxu1 %v4197_v41  ;;  %v1505_v13 = vadd.f32 %v3739_v50, %v4449_v52 }
 0x107   : > { %v1496_v58 = vpop.f32.mrf.mxu0  ;;  %v4497_v59 = vpop.f32.mrf.mxu1 }
 0x108   : > { %v2735_v62 = vadd.f32 %v2734_v54, %v2480_v57  ;;  %v1497_v63 = vadd.f32 %v4449_v52, %v1496_v58  ;;  %v2485_v26 = vmax.f32 %v1505_v13, 0.0 }
 0x109   : > { %v3740_v0 = vpop.f32.mrf.mxu0  ;;  %v4501_v3 = vpop.f32.mrf.mxu1 }
 0x10a   : > { %v2736_v7 = vadd.f32 %v2735_v62, %v2481_v60  ;;  %v2483_v14 = vmax.f32 %v1497_v63, 0.0  ;;  %v1508_v21 = vadd.f32 %v3740_v0, %v4449_v52  ;;  %v4174_v63 = vld [vmem:[%s4318_s14 + $0x1e8] sm:$0xff]  }
 0x10b   : > { %v1499_v10 = vpop.f32.mrf.mxu0  ;;  %v4508_v11 = vpop.f32.mrf.mxu1 }
 0x10c   : > { %v2737_v15 = vadd.f32 %v2736_v7, %v2482_v5  ;;  %v1500_v16 = vadd.f32 %v4449_v52, %v1499_v10  ;;  %v2486_v33 = vmax.f32 %v1508_v21, 0.0  ;;  %v4177_v7 = vld [vmem:[%s4318_s14 + $0x1f0] sm:$0xff]  }
 0x10d   : > { %v3743_v17 = vpop.f32.mrf.mxu0  ;;  %3838 = vmatmul.mubr.bf16.gmra.mxu0 %v4166_v2  ;;  %v4512_v18 = vpop.f32.mrf.mxu1  ;;  %3978 = vmatmul.mubr.bf16.gmra.mxu1 %v4198_v4 }
 0x10e   : > { %v2738_v20 = vadd.f32 %v2737_v15, %v2483_v14  ;;  %v2484_v22 = vmax.f32 %v1500_v16, 0.0  ;;  %3841 = vmatprep.mubr.bf16.mxu0 %v4169_v8  ;;  %v1521_v39 = vadd.f32 %v3743_v17, %v4449_v52  ;;  %3997 = vmatprep.mubr.msk.bf16.mxu1 %vm4244_vm1, %v4243_v47 }
 0x10f   : > { %v1512_v23 = vpop.f32.mrf.mxu0  ;;  %v4516_v24 = vpop.f32.mrf.mxu1 }
 0x110   : > { %v2739_v27 = vadd.f32 %v2738_v20, %v2484_v22  ;;  %v1513_v28 = vadd.f32 %v4449_v52, %v1512_v23  ;;  %v2489_v57 = vmax.f32 %v1521_v39, 0.0 }
 0x111   : > { %v3744_v29 = vpop.f32.mrf.mxu0  ;;  %v4520_v32 = vpop.f32.mrf.mxu1 }
 0x112   : > { %v2740_v34 = vadd.f32 %v2739_v27, %v2485_v26  ;;  %v2487_v40 = vmax.f32 %v1513_v28, 0.0  ;;  %v1524_v48 = vadd.f32 %v3744_v29, %v4449_v52 }
 0x113   : > { %v1515_v37 = vpop.f32.mrf.mxu0  ;;  %v4523_v38 = vpop.f32.mrf.mxu1 }
 0x114   : > { %v2741_v41 = vadd.f32 %v2740_v34, %v2486_v33  ;;  %v1516_v42 = vadd.f32 %v4449_v52, %v1515_v37  ;;  %v2490_v4 = vmax.f32 %v1524_v48, 0.0 }
 0x115   : > { %v3747_v44 = vpop.f32.mrf.mxu0  ;;  %3842 = vmatmul.mubr.bf16.gmra.mxu0 %v4170_v31  ;;  %v3887_v45 = vpop.f32.mrf.mxu1 }
 0x116   : > { %v2742_v46 = vadd.f32 %v2741_v41, %v2487_v40  ;;  %v2488_v50 = vmax.f32 %v1516_v42, 0.0  ;;  %3845 = vmatprep.mubr.bf16.mxu0 %v4173_v35  ;;  %v2097_v9 = vadd.f32 %v3887_v45, %v4449_v52  ;;  %v1537_v13 = vadd.f32 %v3747_v44, %v4449_v52  ;;  %v4178_v41 = vld [vmem:[%s4318_s14 + $0x1f8] sm:$0xff]  }
 0x117   : > { %v1528_v54 = vpop.f32.mrf.mxu0  ;;  %v2088_v56 = vpop.f32.mrf.mxu1 }
 0x118   : > { %v2743_v58 = vadd.f32 %v2742_v46, %v2488_v50  ;;  %v1529_v60 = vadd.f32 %v4449_v52, %v1528_v54  ;;  %v2089_v0 = vadd.f32 %v4449_v52, %v2088_v56  ;;  %v2633_v31 = vmax.f32 %v2097_v9, 0.0  ;;  %v4181_v54 = vld [vmem:[%s4318_s14 + $0x200] sm:$0xff]  }
 0x119   : > { %v3748_v62 = vpop.f32.mrf.mxu0  ;;  %v3888_v2 = vpop.f32.mrf.mxu1  ;;  %v2493_v35 = vmax.f32 %v1537_v13, 0.0 }
 0x11a   : > { %v2744_v5 = vadd.f32 %v2743_v58, %v2489_v57  ;;  %v2491_v14 = vmax.f32 %v1529_v60, 0.0  ;;  %v2631_v20 = vmax.f32 %v2089_v0, 0.0  ;;  %v2100_v21 = vadd.f32 %v3888_v2, %v4449_v52 }
 0x11b   : > { %v1531_v8 = vpop.f32.mrf.mxu0  ;;  %v2091_v10 = vpop.f32.mrf.mxu1  ;;  %v1540_v27 = vadd.f32 %v3748_v62, %v4449_v52 }
 0x11c   : > { %v2745_v15 = vadd.f32 %v2744_v5, %v2490_v4  ;;  %v1532_v16 = vadd.f32 %v4449_v52, %v1531_v8  ;;  %v2092_v22 = vadd.f32 %v4449_v52, %v2091_v10  ;;  %v2634_v42 = vmax.f32 %v2100_v21, 0.0 }
 0x11d   : > { %v3751_v17 = vpop.f32.mrf.mxu0  ;;  %3846 = vmatmul.mubr.bf16.gmra.mxu0 %v4174_v63  ;;  %v3891_v23 = vpop.f32.mrf.mxu1  ;;  %v2494_v48 = vmax.f32 %v1540_v27, 0.0 }
 0x11e   : > { %v2746_v26 = vadd.f32 %v2745_v15, %v2491_v14  ;;  %v2492_v28 = vmax.f32 %v1532_v16, 0.0  ;;  %3849 = vmatprep.mubr.bf16.mxu0 %v4177_v7  ;;  %v2632_v33 = vmax.f32 %v2092_v22, 0.0  ;;  %v2113_v58 = vadd.f32 %v3891_v23, %v4449_v52  ;;  %v4201_v16 = vld [vmem:[%s4912_s3 + $0x28] sm:$0xff]  }
 0x11f   : > { %v1544_v29 = vpop.f32.mrf.mxu0  ;;  %v2104_v34 = vpop.f32.mrf.mxu1  ;;  %v1553_v63 = vadd.f32 %v3751_v17, %v4449_v52  ;;  %3986 = vmatpush3.bf16.msra.mxu1 %v4201_v16 }
 0x120   : > { %v2747_v37 = vadd.f32 %v2746_v26, %v2492_v28  ;;  %v1545_v39 = vadd.f32 %v4449_v52, %v1544_v29  ;;  %v2912_v44 = vadd.f32 %v2632_v33, %v2631_v20  ;;  %v2105_v45 = vadd.f32 %v4449_v52, %v2104_v34  ;;  %3987 = vmatprep.subr.bf16.mxu1 %v4243_v47 }
 0x121   : > { %v3752_v40 = vpop.f32.mrf.mxu0  ;;  %v3892_v46 = vpop.f32.mrf.mxu1  ;;  %v2637_v20 = vmax.f32 %v2113_v58, 0.0  ;;  %v2497_v26 = vmax.f32 %v1553_v63, 0.0 }
 0x122   : > { %v2748_v50 = vadd.f32 %v2747_v37, %v2493_v35  ;;  %v2913_v57 = vadd.f32 %v2912_v44, %v2633_v31  ;;  %v2635_v60 = vmax.f32 %v2105_v45, 0.0  ;;  %v2495_v0 = vmax.f32 %v1545_v39, 0.0  ;;  %v4182_v31 = vld [vmem:[%s4318_s14 + $0x208] sm:$0xff]  }
 0x123   : > { %v1547_v56 = vpop.f32.mrf.mxu0  ;;  %v2107_v62 = vpop.f32.mrf.mxu1  ;;  %v2116_v8 = vadd.f32 %v3892_v46, %v4449_v52  ;;  %v1556_v14 = vadd.f32 %v3752_v40, %v4449_v52 }
 0x124   : > { %v2749_v2 = vadd.f32 %v2748_v50, %v2494_v48  ;;  %v1548_v4 = vadd.f32 %v4449_v52, %v1547_v56  ;;  %v2914_v7 = vadd.f32 %v2913_v57, %v2634_v42  ;;  %v2108_v9 = vadd.f32 %v4449_v52, %v2107_v62 }
 0x125   : > { %v3755_v5 = vpop.f32.mrf.mxu0  ;;  %3850 = vmatmul.mubr.bf16.gmra.mxu0 %v4178_v41  ;;  %v3895_v10 = vpop.f32.mrf.mxu1  ;;  %v2638_v33 = vmax.f32 %v2116_v8, 0.0  ;;  %v2498_v39 = vmax.f32 %v1556_v14, 0.0  ;;  %v4185_v41 = vld [vmem:[%s4318_s14 + $0x210] sm:$0xff]  }
 0x126   : > { %v2750_v13 = vadd.f32 %v2749_v2, %v2495_v0  ;;  %v2496_v15 = vmax.f32 %v1548_v4, 0.0  ;;  %3853 = vmatprep.mubr.bf16.mxu0 %v4181_v54  ;;  %v2915_v21 = vadd.f32 %v2914_v7, %v2635_v60  ;;  %v2636_v22 = vmax.f32 %v2108_v9, 0.0 }
 0x127   : > { %v1560_v17 = vpop.f32.mrf.mxu0  ;;  %v2120_v23 = vpop.f32.mrf.mxu1  ;;  %v2129_v45 = vadd.f32 %v3895_v10, %v4449_v52  ;;  %v1569_v50 = vadd.f32 %v3755_v5, %v4449_v52 }
 0x128   : > { %v2751_v27 = vadd.f32 %v2750_v13, %v2496_v15  ;;  %v1561_v28 = vadd.f32 %v4449_v52, %v1560_v17  ;;  %v2916_v34 = vadd.f32 %v2915_v21, %v2636_v22  ;;  %v2121_v35 = vadd.f32 %v4449_v52, %v2120_v23  ;;  %v4186_v17 = vld [vmem:[%s4318_s14 + $0x218] sm:$0xff]  }
 0x129   : > { %v3756_v29 = vpop.f32.mrf.mxu0  ;;  %v3896_v37 = vpop.f32.mrf.mxu1  ;;  %v2641_v5 = vmax.f32 %v2129_v45, 0.0  ;;  %v2501_v14 = vmax.f32 %v1569_v50, 0.0 }
 0x12a   : > { %v2752_v40 = vadd.f32 %v2751_v27, %v2497_v26  ;;  %v2917_v44 = vadd.f32 %v2916_v34, %v2637_v20  ;;  %v2639_v46 = vmax.f32 %v2121_v35, 0.0  ;;  %v2499_v54 = vmax.f32 %v1561_v28, 0.0 }
 0x12b   : > { %v1563_v42 = vpop.f32.mrf.mxu0  ;;  %v2123_v48 = vpop.f32.mrf.mxu1  ;;  %v2132_v62 = vadd.f32 %v3896_v37, %v4449_v52  ;;  %v1572_v4 = vadd.f32 %v3756_v29, %v4449_v52  ;;  %v4189_v29 = vld [vmem:[%s4318_s14 + $0x220] sm:$0xff]  }
 0x12c   : > { %v2753_v56 = vadd.f32 %v2752_v40, %v2498_v39  ;;  %v1564_v57 = vadd.f32 %v4449_v52, %v1563_v42  ;;  %v2918_v60 = vadd.f32 %v2917_v44, %v2638_v33  ;;  %v2124_v63 = vadd.f32 %v4449_v52, %v2123_v48 }
 0x12d   : > { %v3759_v58 = vpop.f32.mrf.mxu0  ;;  %3854 = vmatmul.mubr.bf16.gmra.mxu0 %v4182_v31  ;;  %v3899_v0 = vpop.f32.mrf.mxu1  ;;  %v2642_v20 = vmax.f32 %v2132_v62, 0.0  ;;  %v2502_v26 = vmax.f32 %v1572_v4, 0.0 }
 0x12e   : > { %v2754_v2 = vadd.f32 %v2753_v56, %v2499_v54  ;;  %v2500_v7 = vmax.f32 %v1564_v57, 0.0  ;;  %3857 = vmatprep.mubr.bf16.mxu0 %v4185_v41  ;;  %v2919_v9 = vadd.f32 %v2918_v60, %v2639_v46  ;;  %v2640_v10 = vmax.f32 %v2124_v63, 0.0 }
 0x12f   : > { %v1576_v8 = vpop.f32.mrf.mxu0  ;;  %v2136_v13 = vpop.f32.mrf.mxu1  ;;  %v2145_v34 = vadd.f32 %v3899_v0, %v4449_v52  ;;  %v1585_v40 = vadd.f32 %v3759_v58, %v4449_v52 }
 0x130   : > { %v2755_v15 = vadd.f32 %v2754_v2, %v2500_v7  ;;  %v2920_v21 = vadd.f32 %v2919_v9, %v2640_v10  ;;  %v2137_v22 = vadd.f32 %v4449_v52, %v2136_v13  ;;  %v1577_v28 = vadd.f32 %v4449_v52, %v1576_v8  ;;  %v4190_v8 = vld [vmem:[%s4318_s14 + $0x228] sm:$0xff]  }
 0x131   : > { %v3760_v16 = vpop.f32.mrf.mxu0  ;;  %v3900_v23 = vpop.f32.mrf.mxu1  ;;  %v2645_v60 = vmax.f32 %v2145_v34, 0.0  ;;  %v2505_v0 = vmax.f32 %v1585_v40, 0.0 }
 0x132   : > { %v2756_v27 = vadd.f32 %v2755_v15, %v2501_v14  ;;  %v2921_v33 = vadd.f32 %v2920_v21, %v2641_v5  ;;  %v2643_v35 = vmax.f32 %v2137_v22, 0.0  ;;  %v2148_v45 = vadd.f32 %v3900_v23, %v4449_v52 }
 0x133   : > { %v1579_v31 = vpop.f32.mrf.mxu0  ;;  %v2139_v37 = vpop.f32.mrf.mxu1  ;;  %v2503_v50 = vmax.f32 %v1577_v28, 0.0  ;;  %v1588_v54 = vadd.f32 %v3760_v16, %v4449_v52 }
 0x134   : > { %v4567_v39 = vadd.f32 %v2756_v27, %v2502_v26  ;;  %v1580_v41 = vadd.f32 %v4449_v52, %v1579_v31  ;;  %v2922_v44 = vadd.f32 %v2921_v33, %v2642_v20  ;;  %v2140_v46 = vadd.f32 %v4449_v52, %v2139_v37 }
 0x135   : > { %v3763_v42 = vpop.f32.mrf.mxu0  ;;  %3858 = vmatmul.mubr.bf16.gmra.mxu0 %v4186_v17  ;;  %v3903_v48 = vpop.f32.mrf.mxu1  ;;  %v2646_v5 = vmax.f32 %v2148_v45, 0.0  ;;  %v2506_v14 = vmax.f32 %v1588_v54, 0.0 }
 0x136   : > { %v2504_v56 = vmax.f32 %v1580_v41, 0.0  ;;  %3861 = vmatprep.mubr.bf16.mxu0 %v4189_v29  ;;  %v2923_v62 = vadd.f32 %v2922_v44, %v2643_v35  ;;  %v2644_v58 = vmax.f32 %v2140_v46, 0.0  ;;  %v2161_v20 = vadd.f32 %v3903_v48, %v4449_v52 }
 0x137   : > { %v1592_v57 = vpop.f32.mrf.mxu0  ;;  %v2152_v63 = vpop.f32.mrf.mxu1  ;;  %v1601_v23 = vadd.f32 %v3763_v42, %v4449_v52 }
 0x138   : > { %v2764_v2 = vadd.f32 %v2504_v56, %v2503_v50  ;;  %v1593_v4 = vadd.f32 %v4449_v52, %v1592_v57  ;;  %v2924_v9 = vadd.f32 %v2923_v62, %v2644_v58  ;;  %v2153_v10 = vadd.f32 %v4449_v52, %v2152_v63 }
 0x139   : > { %v3764_v7 = vpop.f32.mrf.mxu0  ;;  %v3904_v13 = vpop.f32.mrf.mxu1  ;;  %v2649_v45 = vmax.f32 %v2161_v20, 0.0  ;;  %v2509_v50 = vmax.f32 %v1601_v23, 0.0 }
 0x13a   : > { %v2765_v15 = vadd.f32 %v2764_v2, %v2505_v0  ;;  %v2925_v17 = vadd.f32 %v2924_v9, %v2645_v60  ;;  %v2647_v21 = vmax.f32 %v2153_v10, 0.0  ;;  %v2507_v26 = vmax.f32 %v1593_v4, 0.0 }
 0x13b   : > { %v1595_v16 = vpop.f32.mrf.mxu0  ;;  %v2155_v22 = vpop.f32.mrf.mxu1  ;;  %v2164_v33 = vadd.f32 %v3904_v13, %v4449_v52  ;;  %v1604_v40 = vadd.f32 %v3764_v7, %v4449_v52 }
 0x13c   : > { %v2766_v27 = vadd.f32 %v2765_v15, %v2506_v14  ;;  %v1596_v28 = vadd.f32 %v4449_v52, %v1595_v16  ;;  %v2926_v31 = vadd.f32 %v2925_v17, %v2646_v5  ;;  %v2156_v34 = vadd.f32 %v4449_v52, %v2155_v22 }
 0x13d   : > { %v3767_v29 = vpop.f32.mrf.mxu0  ;;  %3862 = vmatmul.mubr.bf16.gmra.mxu0 %v4190_v8  ;;  %v3907_v35 = vpop.f32.mrf.mxu1  ;;  %v2650_v60 = vmax.f32 %v2164_v33, 0.0  ;;  %v2510_v0 = vmax.f32 %v1604_v40, 0.0 }
 0x13e   : > { %v2767_v37 = vadd.f32 %v2766_v27, %v2507_v26  ;;  %v2508_v41 = vmax.f32 %v1596_v28, 0.0  ;;  %v2927_v46 = vadd.f32 %v2926_v31, %v2647_v21  ;;  %v2648_v42 = vmax.f32 %v2156_v34, 0.0 }
 0x13f   : > { %v1608_v44 = vpop.f32.mrf.mxu0  ;;  %v2168_v48 = vpop.f32.mrf.mxu1  ;;  %v2177_v8 = vadd.f32 %v3907_v35, %v4449_v52  ;;  %v1617_v10 = vadd.f32 %v3767_v29, %v4449_v52 }
 0x140   : > { %v2768_v54 = vadd.f32 %v2767_v37, %v2508_v41  ;;  %v1609_v56 = vadd.f32 %v4449_v52, %v1608_v44  ;;  %v2928_v62 = vadd.f32 %v2927_v46, %v2648_v42  ;;  %v2169_v58 = vadd.f32 %v4449_v52, %v2168_v48  ;;  %v4202_v44 = vld [vmem:[%s4912_s3 + $0x20] sm:$0xff]  }
 0x141   : > { %v3768_v57 = vpop.f32.mrf.mxu0  ;;  %v3908_v63 = vpop.f32.mrf.mxu1  ;;  %v2653_v31 = vmax.f32 %v2177_v8, 0.0  ;;  %v2513_v35 = vmax.f32 %v1617_v10, 0.0  ;;  %3988 = vmatpush3.bf16.msra.mxu1 %v4202_v44 }
 0x142   : > { %v2769_v2 = vadd.f32 %v2768_v54, %v2509_v50  ;;  %v2929_v7 = vadd.f32 %v2928_v62, %v2649_v45  ;;  %v2651_v5 = vmax.f32 %v2169_v58, 0.0  ;;  %v2511_v13 = vmax.f32 %v1609_v56, 0.0  ;;  %3989 = vmatprep.subr.bf16.mxu1 %v4243_v47 }
 0x143   : > { %v1611_v4 = vpop.f32.mrf.mxu0  ;;  %v2171_v9 = vpop.f32.mrf.mxu1  ;;  %v2180_v20 = vadd.f32 %v3908_v63, %v4449_v52  ;;  %v1620_v26 = vadd.f32 %v3768_v57, %v4449_v52 }
 0x144   : > { %v2770_v14 = vadd.f32 %v2769_v2, %v2510_v0  ;;  %v1612_v15 = vadd.f32 %v4449_v52, %v1611_v4  ;;  %v2930_v17 = vadd.f32 %v2929_v7, %v2650_v60  ;;  %v2172_v21 = vadd.f32 %v4449_v52, %v2171_v9 }
 0x145   : > { %v3771_v16 = vpop.f32.mrf.mxu0  ;;  %v3911_v22 = vpop.f32.mrf.mxu1  ;;  %v2654_v46 = vmax.f32 %v2180_v20, 0.0  ;;  %v2514_v50 = vmax.f32 %v1620_v26, 0.0 }
 0x146   : > { %v2771_v23 = vadd.f32 %v2770_v14, %v2511_v13  ;;  %v2512_v27 = vmax.f32 %v1612_v15, 0.0  ;;  %v2931_v33 = vadd.f32 %v2930_v17, %v2651_v5  ;;  %v2652_v34 = vmax.f32 %v2172_v21, 0.0 }
 0x147   : > { %v1624_v28 = vpop.f32.mrf.mxu0  ;;  %v2184_v29 = vpop.f32.mrf.mxu1  ;;  %v1633_v56 = vadd.f32 %v3771_v16, %v4449_v52  ;;  %v2193_v62 = vadd.f32 %v3911_v22, %v4449_v52 }
 0x148   : > { %v2772_v37 = vadd.f32 %v2771_v23, %v2512_v27  ;;  %v1625_v40 = vadd.f32 %v4449_v52, %v1624_v28  ;;  %v2185_v41 = vadd.f32 %v4449_v52, %v2184_v29  ;;  %v2932_v42 = vadd.f32 %v2931_v33, %v2652_v34 }
 0x149   : > { %v3772_v45 = vpop.f32.mrf.mxu0  ;;  %v3912_v48 = vpop.f32.mrf.mxu1  ;;  %v2657_v20 = vmax.f32 %v2193_v62, 0.0  ;;  %v2517_v23 = vmax.f32 %v1633_v56, 0.0 }
 0x14a   : > { %v2773_v54 = vadd.f32 %v2772_v37, %v2513_v35  ;;  %v2933_v60 = vadd.f32 %v2932_v42, %v2653_v31  ;;  %v2655_v58 = vmax.f32 %v2185_v41, 0.0  ;;  %v2515_v0 = vmax.f32 %v1625_v40, 0.0 }
 0x14b   : > { %v1627_v57 = vpop.f32.mrf.mxu0  ;;  %v2187_v63 = vpop.f32.mrf.mxu1  ;;  %v2196_v9 = vadd.f32 %v3912_v48, %v4449_v52  ;;  %v1636_v14 = vadd.f32 %v3772_v45, %v4449_v52 }
 0x14c   : > { %v2774_v2 = vadd.f32 %v2773_v54, %v2514_v50  ;;  %v1628_v4 = vadd.f32 %v4449_v52, %v1627_v57  ;;  %v2188_v7 = vadd.f32 %v4449_v52, %v2187_v63  ;;  %v2934_v5 = vadd.f32 %v2933_v60, %v2654_v46 }
 0x14d   : > { %v3775_v8 = vpop.f32.mrf.mxu0  ;;  %v3915_v10 = vpop.f32.mrf.mxu1  ;;  %v2658_v33 = vmax.f32 %v2196_v9, 0.0  ;;  %v2518_v35 = vmax.f32 %v1636_v14, 0.0 }
 0x14e   : > { %v2775_v13 = vadd.f32 %v2774_v2, %v2515_v0  ;;  %v2516_v15 = vmax.f32 %v1628_v4, 0.0  ;;  %v2656_v16 = vmax.f32 %v2188_v7, 0.0  ;;  %v2935_v21 = vadd.f32 %v2934_v5, %v2655_v58 }
 0x14f   : > { %v1640_v17 = vpop.f32.mrf.mxu0  ;;  %v2200_v22 = vpop.f32.mrf.mxu1  ;;  %v1649_v40 = vadd.f32 %v3775_v8, %v4449_v52  ;;  %v2209_v45 = vadd.f32 %v3915_v10, %v4449_v52 }
 0x150   : > { %v2776_v26 = vadd.f32 %v2775_v13, %v2516_v15  ;;  %v1641_v27 = vadd.f32 %v4449_v52, %v1640_v17  ;;  %v2201_v28 = vadd.f32 %v4449_v52, %v2200_v22  ;;  %v2936_v34 = vadd.f32 %v2935_v21, %v2656_v16 }
 0x151   : > { %v3776_v31 = vpop.f32.mrf.mxu0  ;;  %v3916_v29 = vpop.f32.mrf.mxu1  ;;  %v2661_v8 = vmax.f32 %v2209_v45, 0.0  ;;  %v2521_v10 = vmax.f32 %v1649_v40, 0.0 }
 0x152   : > { %v2777_v37 = vadd.f32 %v2776_v26, %v2517_v23  ;;  %v2937_v44 = vadd.f32 %v2936_v34, %v2657_v20  ;;  %v2659_v46 = vmax.f32 %v2201_v28, 0.0  ;;  %v2519_v48 = vmax.f32 %v1641_v27, 0.0 }
 0x153   : > { %v1643_v41 = vpop.f32.mrf.mxu0  ;;  %v2203_v42 = vpop.f32.mrf.mxu1  ;;  %v2212_v62 = vadd.f32 %v3916_v29, %v4449_v52  ;;  %v1652_v0 = vadd.f32 %v3776_v31, %v4449_v52 }
 0x154   : > { %v2778_v50 = vadd.f32 %v2777_v37, %v2518_v35  ;;  %v1644_v54 = vadd.f32 %v4449_v52, %v1643_v41  ;;  %v2204_v56 = vadd.f32 %v4449_v52, %v2203_v42  ;;  %v2938_v60 = vadd.f32 %v2937_v44, %v2658_v33 }
 0x155   : > { %v3779_v57 = vpop.f32.mrf.mxu0  ;;  %v3919_v58 = vpop.f32.mrf.mxu1  ;;  %v2662_v17 = vmax.f32 %v2212_v62, 0.0  ;;  %v2522_v23 = vmax.f32 %v1652_v0, 0.0 }
 0x156   : > { %v2779_v63 = vadd.f32 %v2778_v50, %v2519_v48  ;;  %v2520_v2 = vmax.f32 %v1644_v54, 0.0  ;;  %v2660_v4 = vmax.f32 %v2204_v56, 0.0  ;;  %v2939_v5 = vadd.f32 %v2938_v60, %v2659_v46 }
 0x157   : > { %v1656_v7 = vpop.f32.mrf.mxu0  ;;  %v2216_v9 = vpop.f32.mrf.mxu1  ;;  %v2225_v21 = vadd.f32 %v3919_v58, %v4449_v52  ;;  %v1665_v27 = vadd.f32 %v3779_v57, %v4449_v52  ;;  %v4203_v57 = vld [vmem:[%s4912_s3 + $0x18] sm:$0xff]  }
 0x158   : > { %v2780_v13 = vadd.f32 %v2779_v63, %v2520_v2  ;;  %v1657_v14 = vadd.f32 %v4449_v52, %v1656_v7  ;;  %v2217_v15 = vadd.f32 %v4449_v52, %v2216_v9  ;;  %v2940_v20 = vadd.f32 %v2939_v5, %v2660_v4  ;;  %3990 = vmatpush3.bf16.msra.mxu1 %v4203_v57 }
 0x159   : > { %v3780_v16 = vpop.f32.mrf.mxu0  ;;  %v3920_v22 = vpop.f32.mrf.mxu1  ;;  %v2665_v46 = vmax.f32 %v2225_v21, 0.0  ;;  %v2525_v60 = vmax.f32 %v1665_v27, 0.0  ;;  %3991 = vmatprep.subr.bf16.mxu1 %v4243_v47  ;;  %v2758_v27 = vrot.slane %v4567_v39, 4 }
 0x15a   : > { %v2781_v26 = vadd.f32 %v2780_v13, %v2521_v10  ;;  %v2523_v28 = vmax.f32 %v1657_v14, 0.0  ;;  %v2941_v33 = vadd.f32 %v2940_v20, %v2661_v8  ;;  %v2663_v34 = vmax.f32 %v2217_v15, 0.0 }
 0x15b   : > { %v1659_v31 = vpop.f32.mrf.mxu0  ;;  %v2219_v29 = vpop.f32.mrf.mxu1  ;;  %v2228_v40 = vadd.f32 %v3920_v22, %v4449_v52  ;;  %v1668_v50 = vadd.f32 %v3780_v16, %v4449_v52  ;;  %v2759_v57 = vadd.f32 %v2758_v27, %v4567_v39 }
 0x15c   : > { %v2782_v35 = vadd.f32 %v2781_v26, %v2522_v23  ;;  %v1660_v37 = vadd.f32 %v4449_v52, %v1659_v31  ;;  %v2220_v41 = vadd.f32 %v4449_v52, %v2219_v29  ;;  %v4618_v45 = vadd.f32 %v2941_v33, %v2662_v17 }
 0x15d   : > { %v3783_v44 = vpop.f32.mrf.mxu0  ;;  %v3923_v42 = vpop.f32.mrf.mxu1  ;;  %v2666_v2 = vmax.f32 %v2228_v40, 0.0  ;;  %v2526_v9 = vmax.f32 %v1668_v50, 0.0 }
 0x15e   : > { %v2783_v48 = vadd.f32 %v2782_v35, %v2523_v28  ;;  %v2524_v54 = vmax.f32 %v1660_v37, 0.0  ;;  %v2664_v56 = vmax.f32 %v2220_v41, 0.0  ;;  %v1681_v14 = vadd.f32 %v3783_v44, %v4449_v52 }
 0x15f   : > { %v1672_v62 = vpop.f32.mrf.mxu0  ;;  %v2232_v58 = vpop.f32.mrf.mxu1  ;;  %v2241_v16 = vadd.f32 %v3923_v42, %v4449_v52 }
 0x160   : > { %v2784_v63 = vadd.f32 %v2783_v48, %v2524_v54  ;;  %v1673_v0 = vadd.f32 %v4449_v52, %v1672_v62  ;;  %v2949_v4 = vadd.f32 %v2664_v56, %v2663_v34  ;;  %v2233_v8 = vadd.f32 %v4449_v52, %v2232_v58 }
 0x161   : > { %v3784_v7 = vpop.f32.mrf.mxu0  ;;  %v3924_v5 = vpop.f32.mrf.mxu1  ;;  %v2669_v44 = vmax.f32 %v2241_v16, 0.0  ;;  %v2529_v48 = vmax.f32 %v1681_v14, 0.0  ;;  %v2760_v16 = vrot.slane %v2759_v57, 2 }
 0x162   : > { %v2785_v10 = vadd.f32 %v2784_v63, %v2525_v60  ;;  %v2950_v13 = vadd.f32 %v2949_v4, %v2665_v46  ;;  %v2667_v17 = vmax.f32 %v2233_v8, 0.0  ;;  %v2527_v21 = vmax.f32 %v1673_v0, 0.0 }
 0x163   : > { %v1675_v15 = vpop.f32.mrf.mxu0  ;;  %v2235_v20 = vpop.f32.mrf.mxu1  ;;  %v2244_v31 = vadd.f32 %v3924_v5, %v4449_v52  ;;  %v1684_v35 = vadd.f32 %v3784_v7, %v4449_v52 }
 0x164   : > { %v2786_v22 = vadd.f32 %v2785_v10, %v2526_v9  ;;  %v1676_v23 = vadd.f32 %v4449_v52, %v1675_v15  ;;  %v2951_v26 = vadd.f32 %v2950_v13, %v2666_v2  ;;  %v2236_v33 = vadd.f32 %v4449_v52, %v2235_v20 }
 0x165   : > { %v3787_v28 = vpop.f32.mrf.mxu0  ;;  %v3927_v34 = vpop.f32.mrf.mxu1  ;;  %v2670_v62 = vmax.f32 %v2244_v31, 0.0  ;;  %v2530_v0 = vmax.f32 %v1684_v35, 0.0 }
 0x166   : > { %v2787_v29 = vadd.f32 %v2786_v22, %v2527_v21  ;;  %v2528_v37 = vmax.f32 %v1676_v23, 0.0  ;;  %v2952_v40 = vadd.f32 %v2951_v26, %v2667_v17  ;;  %v2668_v46 = vmax.f32 %v2236_v33, 0.0 }
 0x167   : > { %v1688_v41 = vpop.f32.mrf.mxu0  ;;  %v2248_v42 = vpop.f32.mrf.mxu1  ;;  %v1697_v4 = vadd.f32 %v3787_v28, %v4449_v52  ;;  %v2257_v5 = vadd.f32 %v3927_v34, %v4449_v52 }
 0x168   : > { %v2788_v50 = vadd.f32 %v2787_v29, %v2528_v37  ;;  %v1689_v54 = vadd.f32 %v4449_v52, %v1688_v41  ;;  %v2249_v56 = vadd.f32 %v4449_v52, %v2248_v42  ;;  %v2953_v58 = vadd.f32 %v2952_v40, %v2668_v46 }
 0x169   : > { %v3788_v60 = vpop.f32.mrf.mxu0  ;;  %v3928_v63 = vpop.f32.mrf.mxu1  ;;  %v2673_v33 = vmax.f32 %v2257_v5, 0.0  ;;  %v2533_v35 = vmax.f32 %v1697_v4, 0.0  ;;  %v2761_v41 = vadd.f32 %v2760_v16, %v2759_v57 }
 0x16a   : > { %v2789_v2 = vadd.f32 %v2788_v50, %v2529_v48  ;;  %v2954_v8 = vadd.f32 %v2953_v58, %v2669_v44  ;;  %v2671_v9 = vmax.f32 %v2249_v56, 0.0  ;;  %v2531_v13 = vmax.f32 %v1689_v54, 0.0  ;;  %v4648_v58 = vld [vmem:[%s4911_s2] ss:$0 sm:$0xff] }
 0x16b   : > { %v1691_v7 = vpop.f32.mrf.mxu0  ;;  %v2251_v10 = vpop.f32.mrf.mxu1  ;;  %v2260_v21 = vadd.f32 %v3928_v63, %v4449_v52  ;;  %v1700_v26 = vadd.f32 %v3788_v60, %v4449_v52 }
 0x16c   : > { %v2790_v14 = vadd.f32 %v2789_v2, %v2530_v0  ;;  %v1692_v15 = vadd.f32 %v4449_v52, %v1691_v7  ;;  %v2252_v39 = vadd.f32 %v4449_v52, %v2251_v10  ;;  %v2955_v20 = vadd.f32 %v2954_v8, %v2670_v62 }
 0x16d   : > { %v3791_v17 = vpop.f32.mrf.mxu0  ;;  %v3931_v22 = vpop.f32.mrf.mxu1  ;;  %v2674_v42 = vmax.f32 %v2260_v21, 0.0  ;;  %v2534_v54 = vmax.f32 %v1700_v26, 0.0  ;;  %v2762_v8 = vrot.slane %v2761_v41, 1 }
 0x16e   : > { %v2791_v23 = vadd.f32 %v2790_v14, %v2531_v13  ;;  %v2532_v27 = vmax.f32 %v1692_v15, 0.0  ;;  %v2672_v28 = vmax.f32 %v2252_v39, 0.0  ;;  %v2956_v34 = vadd.f32 %v2955_v20, %v2671_v9 }
 0x16f   : > { %v1704_v31 = vpop.f32.mrf.mxu0  ;;  %v2264_v29 = vpop.f32.mrf.mxu1  ;;  %v2273_v63 = vadd.f32 %v4648_v58, %v3931_v22 }
 0x170   : > { %v2792_v37 = vadd.f32 %v2791_v23, %v2532_v27  ;;  %v2265_v40 = vadd.f32 %v4449_v52, %v2264_v29  ;;  %v1705_v44 = vadd.f32 %v4449_v52, %v1704_v31  ;;  %v2957_v48 = vadd.f32 %v2956_v34, %v2672_v28 }
 0x171   : > { %v3792_v46 = vpop.f32.mrf.mxu0  ;;  %v3932_v50 = vpop.f32.mrf.mxu1  ;;  %v1713_v52 = vadd.f32 %v4648_v58, %v3791_v17  ;;  %v2677_v22 = vmax.f32 %v2273_v63, 0.0 }
 0x172   : > { %v2793_v56 = vadd.f32 %v2792_v37, %v2533_v35  ;;  %v2958_v62 = vadd.f32 %v2957_v48, %v2673_v33  ;;  %v2675_v0 = vmax.f32 %v2265_v40, 0.0  ;;  %v2535_v5 = vmax.f32 %v1705_v44, 0.0 }
 0x173   : > { %v1707_v60 = vpop.f32.mrf.mxu0  ;;  %v2267_v2 = vpop.f32.mrf.mxu1  ;;  %v2276_v13 = vadd.f32 %v4648_v58, %v3932_v50  ;;  %v1716_v39 = vadd.f32 %v4648_v58, %v3792_v46  ;;  %v2537_v27 = vmax.f32 %v1713_v52, 0.0  ;;  %v2763_v33 = vadd.f32 %v2762_v8, %v2761_v41 }
 0x174   : > { %v2794_v57 = vadd.f32 %v2793_v56, %v2534_v54  ;;  %v1708_v4 = vadd.f32 %v4648_v58, %v1707_v60  ;;  %v2268_v7 = vadd.f32 %v4648_v58, %v2267_v2  ;;  %v2959_v10 = vadd.f32 %v2958_v62, %v2674_v42 }
 0x175   : > { %v3795_v9 = vpop.f32.mrf.mxu0  ;;  %v3935_v14 = vpop.f32.mrf.mxu1  ;;  %v2678_v29 = vmax.f32 %v2276_v13, 0.0  ;;  %v2538_v46 = vmax.f32 %v1716_v39, 0.0 }
 0x176   : > { %v2795_v15 = vrot.slane %v2794_v57, 4  ;;  %v2536_v16 = vmax.f32 %v1708_v4, 0.0  ;;  %v2676_v20 = vmax.f32 %v2268_v7, 0.0  ;;  %v2960_v23 = vadd.f32 %v2959_v10, %v2675_v0 }
 0x177   : > { %v1720_v21 = vpop.f32.mrf.mxu0  ;;  %v2280_v17 = vpop.f32.mrf.mxu1  ;;  %v1729_v48 = vadd.f32 %v4648_v58, %v3795_v9  ;;  %v2289_v56 = vadd.f32 %v4648_v58, %v3935_v14 }
 0x178   : > { %v2796_v26 = vadd.f32 %v2795_v15, %v2794_v57  ;;  %v2801_v28 = vadd.f32 %v2536_v16, %v2535_v5  ;;  %v1721_v31 = vadd.f32 %v4648_v58, %v1720_v21  ;;  %v2961_v35 = vadd.f32 %v2960_v23, %v2676_v20 }
 0x179   : > { %v3796_v34 = vpop.f32.mrf.mxu0  ;;  %v2281_v37 = vadd.f32 %v4648_v58, %v2280_v17  ;;  %v3936_v40 = vpop.f32.mrf.mxu1  ;;  %v3024_v57 = vmul.f32 0.00390625, %v2763_v33  ;;  %v2681_v39 = vmax.f32 %v2289_v56, 0.0  ;;  %v2541_v23 = vmax.f32 %v1729_v48, 0.0 }
 0x17a   : > { %v2797_v44 = vrot.slane %v2796_v26, 2  ;;  %v2802_v42 = vadd.f32 %v2801_v28, %v2537_v27  ;;  %v2962_v54 = vadd.f32 %v2961_v35, %v2677_v22  ;;  %v2539_v0 = vmax.f32 %v1721_v31, 0.0 }
 0x17b   : > { %v1723_v50 = vpop.f32.mrf.mxu0  ;;  %v2679_v60 = vmax.f32 %v2281_v37, 0.0  ;;  %v2283_v62 = vpop.f32.mrf.mxu1  ;;  %v2292_v7 = vadd.f32 %v4648_v58, %v3936_v40  ;;  %v1732_v13 = vadd.f32 %v4648_v58, %v3796_v34  ;;  %v3032_v27 = vpack.c.bf16 %v3024_v57, %v3024_v57 }
 0x17c   : > { %v2798_v63 = vadd.f32 %v2797_v44, %v2796_v26  ;;  %v2803_v41 = vadd.f32 %v2802_v42, %v2538_v46  ;;  %v1724_v2 = vadd.f32 %v4648_v58, %v1723_v50  ;;  %v2963_v4 = vadd.f32 %v2962_v54, %v2678_v29 }
 0x17d   : > { %v3799_v52 = vpop.f32.mrf.mxu0  ;;  %v2284_v8 = vadd.f32 %v4648_v58, %v2283_v62  ;;  %v3939_v5 = vpop.f32.mrf.mxu1  ;;  %v2682_v31 = vmax.f32 %v2292_v7, 0.0  ;;  %v2542_v34 = vmax.f32 %v1732_v13, 0.0 }
 0x17e   : > { %v2799_v9 = vrot.slane %v2798_v63, 1  ;;  %v2804_v10 = vadd.f32 %v2803_v41, %v2539_v0  ;;  %v2540_v14 = vmax.f32 %v1724_v2, 0.0  ;;  %v2964_v16 = vadd.f32 %v2963_v4, %v2679_v60 }
 0x17f   : > { %v1736_v15 = vpop.f32.mrf.mxu0  ;;  %v2680_v20 = vmax.f32 %v2284_v8, 0.0  ;;  %v2296_v21 = vpop.f32.mrf.mxu1  ;;  %v1745_v44 = vadd.f32 %v4648_v58, %v3799_v52  ;;  %v2305_v48 = vadd.f32 %v4648_v58, %v3939_v5  ;;  %v3071_v0 = vunpack.c.l.b16 %v3032_v27 }
 0x180   : > { %v2800_v22 = vadd.f32 %v2799_v9, %v2798_v63  ;;  %v2805_v17 = vadd.f32 %v2804_v10, %v2540_v14  ;;  %v1737_v26 = vadd.f32 %v4648_v58, %v1736_v15  ;;  %v2297_v29 = vadd.f32 %v4648_v58, %v2296_v21 }
 0x181   : > { %v3800_v28 = vpop.f32.mrf.mxu0  ;;  %v2965_v33 = vadd.f32 %v2964_v16, %v2680_v20  ;;  %v3940_v35 = vpop.f32.mrf.mxu1  ;;  %v2685_v13 = vmax.f32 %v2305_v48, 0.0  ;;  %v2545_v20 = vmax.f32 %v1745_v44, 0.0 }
 0x182   : > { %v3025_v37 = vmul.f32 0.00390625, %v2800_v22  ;;  %v2806_v40 = vadd.f32 %v2805_v17, %v2541_v23  ;;  %v2683_v50 = vmax.f32 %v2297_v29, 0.0  ;;  %v2543_v60 = vmax.f32 %v1737_v26, 0.0  ;;  %v4204_v23 = vld [vmem:[%s4912_s3 + $0x10] sm:$0xff]  }
 0x183   : > { %v1739_v46 = vpop.f32.mrf.mxu0  ;;  %v2966_v42 = vadd.f32 %v2965_v33, %v2681_v39  ;;  %v2299_v54 = vpop.f32.mrf.mxu1  ;;  %v2308_v57 = vadd.f32 %v4648_v58, %v3940_v35  ;;  %v1748_v9 = vadd.f32 %v4648_v58, %v3800_v28  ;;  %3992 = vmatpush3.bf16.msra.mxu1 %v4204_v23 }
 0x184   : > { %v3033_v56 = vpack.c.bf16 %v3025_v37, %v3025_v37  ;;  %v2807_v62 = vadd.f32 %v2806_v40, %v2542_v34  ;;  %v1740_v63 = vadd.f32 %v4648_v58, %v1739_v46  ;;  %v2300_v4 = vadd.f32 %v4648_v58, %v2299_v54  ;;  %3993 = vmatprep.subr.bf16.mxu1 %v4243_v47 }
 0x185   : > { %v3803_v41 = vpop.f32.mrf.mxu0  ;;  %v2967_v2 = vadd.f32 %v2966_v42, %v2682_v31  ;;  %v3943_v7 = vpop.f32.mrf.mxu1  ;;  %v2686_v26 = vmax.f32 %v2308_v57, 0.0  ;;  %v2546_v33 = vmax.f32 %v1748_v9, 0.0 }
 0x186   : > { %v3072_v52 = vunpack.c.l.b16 %v3033_v56  ;;  %v2808_v8 = vadd.f32 %v2807_v62, %v2543_v60  ;;  %v2544_v5 = vmax.f32 %v1740_v63, 0.0  ;;  %v2684_v15 = vmax.f32 %v2300_v4, 0.0 }
 0x187   : > { %v1752_v10 = vpop.f32.mrf.mxu0  ;;  %v2968_v14 = vadd.f32 %v2967_v2, %v2683_v50  ;;  %v2312_v39 = vpop.f32.mrf.mxu1  ;;  %v2321_v34 = vadd.f32 %v4648_v58, %v3943_v7  ;;  %v1761_v46 = vadd.f32 %v4648_v58, %v3803_v41 }
 0x188   : > { %v4673_v16 = vsel %vm3079_vm0, %v3072_v52, %v3071_v0  ;;  %v2809_v21 = vadd.f32 %v2808_v8, %v2544_v5  ;;  %v1753_v22 = vadd.f32 %v4648_v58, %v1752_v10  ;;  %v2313_v28 = vadd.f32 %v4648_v58, %v2312_v39 }
 0x189   : > { %v3804_v17 = vpop.f32.mrf.mxu0  ;;  %v2969_v27 = vadd.f32 %v2968_v14, %v2684_v15  ;;  %v3944_v31 = vpop.f32.mrf.mxu1  ;;  %v2689_v7 = vmax.f32 %v2321_v34, 0.0  ;;  %v2549_v9 = vmax.f32 %v1761_v46, 0.0 }
 0x18a   : > { %v2810_v29 = vadd.f32 %v2809_v21, %v2545_v20  ;;  %v2687_v40 = vmax.f32 %v2313_v28, 0.0  ;;  %v2547_v42 = vmax.f32 %v1753_v22, 0.0  ;;  %v2324_v60 = vadd.f32 %v4648_v58, %v3944_v31 }
 0x18b   : > { %v1755_v35 = vpop.f32.mrf.mxu0  ;;  %v2970_v37 = vadd.f32 %v2969_v27, %v2685_v13  ;;  %v2315_v44 = vpop.f32.mrf.mxu1  ;;  %v1764_v2 = vadd.f32 %v4648_v58, %v3804_v17 }
 0x18c   : > { %v2811_v48 = vadd.f32 %v2810_v29, %v2546_v33  ;;  %v1756_v50 = vadd.f32 %v4648_v58, %v1755_v35  ;;  %v2316_v62 = vadd.f32 %v4648_v58, %v2315_v44  ;;  %v2690_v14 = vmax.f32 %v2324_v60, 0.0 }
 0x18d   : > { %v3807_v54 = vpop.f32.mrf.mxu0  ;;  %v2971_v56 = vadd.f32 %v2970_v37, %v2686_v26  ;;  %v3947_v63 = vpop.f32.mrf.mxu1  ;;  %v2550_v21 = vmax.f32 %v1764_v2, 0.0 }
 0x18e   : > { %v2812_v0 = vadd.f32 %v2811_v48, %v2547_v42  ;;  %v2548_v57 = vmax.f32 %v1756_v50, 0.0  ;;  %v2688_v8 = vmax.f32 %v2316_v62, 0.0  ;;  %v2337_v26 = vadd.f32 %v4648_v58, %v3947_v63 }
 0x18f   : > { %v1768_v4 = vpop.f32.mrf.mxu0  ;;  %v2972_v52 = vadd.f32 %v2971_v56, %v2687_v40  ;;  %v2328_v41 = vpop.f32.mrf.mxu1  ;;  %v1777_v31 = vadd.f32 %v4648_v58, %v3807_v54 }
 0x190   : > { %v2813_v5 = vadd.f32 %v2812_v0, %v2548_v57  ;;  %v1769_v10 = vadd.f32 %v4648_v58, %v1768_v4  ;;  %v2329_v39 = vadd.f32 %v4648_v58, %v2328_v41  ;;  %v2693_v60 = vmax.f32 %v2337_v26, 0.0 }
 0x191   : > { %v3808_v13 = vpop.f32.mrf.mxu0  ;;  %v2973_v15 = vadd.f32 %v2972_v52, %v2688_v8  ;;  %v3948_v20 = vpop.f32.mrf.mxu1  ;;  %v2553_v54 = vmax.f32 %v1777_v31, 0.0 }
 0x192   : > { %v2814_v22 = vadd.f32 %v2813_v5, %v2549_v9  ;;  %v2691_v27 = vmax.f32 %v2329_v39, 0.0  ;;  %v2551_v33 = vmax.f32 %v1769_v10, 0.0  ;;  %v2340_v40 = vadd.f32 %v4648_v58, %v3948_v20 }
 0x193   : > { %v1771_v23 = vpop.f32.mrf.mxu0  ;;  %v2974_v17 = vadd.f32 %v2973_v15, %v2689_v7  ;;  %v2331_v28 = vpop.f32.mrf.mxu1  ;;  %v1780_v42 = vadd.f32 %v4648_v58, %v3808_v13 }
 0x194   : > { %v2815_v29 = vadd.f32 %v2814_v22, %v2550_v21  ;;  %v1772_v35 = vadd.f32 %v4648_v58, %v1771_v23  ;;  %v2332_v44 = vadd.f32 %v4648_v58, %v2331_v28  ;;  %v2694_v4 = vmax.f32 %v2340_v40, 0.0 }
 0x195   : > { %v3811_v37 = vpop.f32.mrf.mxu0  ;;  %v2975_v34 = vadd.f32 %v2974_v17, %v2690_v14  ;;  %v3951_v50 = vpop.f32.mrf.mxu1  ;;  %v2554_v52 = vmax.f32 %v1780_v42, 0.0 }
 0x196   : > { %v2816_v46 = vadd.f32 %v2815_v29, %v2551_v33  ;;  %v2552_v48 = vmax.f32 %v1772_v35, 0.0  ;;  %v2692_v63 = vmax.f32 %v2332_v44, 0.0  ;;  %v1793_v10 = vadd.f32 %v4648_v58, %v3811_v37 }
 0x197   : > { %v1784_v56 = vpop.f32.mrf.mxu0  ;;  %v2976_v62 = vadd.f32 %v2975_v34, %v2691_v27  ;;  %v2344_v41 = vpop.f32.mrf.mxu1 }
 0x198   : > { %v2817_v0 = vadd.f32 %v2816_v46, %v2552_v48  ;;  %v1785_v2 = vadd.f32 %v4648_v58, %v1784_v56  ;;  %v2557_v27 = vmax.f32 %v1793_v10, 0.0  ;;  %v2345_v56 = vadd.f32 %v4648_v58, %v2344_v41 }
 0x199   : > { %v3812_v57 = vpop.f32.mrf.mxu0  ;;  %v2977_v7 = vadd.f32 %v2976_v62, %v2692_v63  ;;  %v3952_v17 = vpop.f32.mrf.mxu1 }
 0x19a   : > { %v2818_v8 = vadd.f32 %v2817_v0, %v2553_v54  ;;  %v2555_v13 = vmax.f32 %v1785_v2, 0.0  ;;  %v1796_v22 = vadd.f32 %v4648_v58, %v3812_v57 }
 0x19b   : > { %v1787_v9 = vpop.f32.mrf.mxu0  ;;  %v2978_v5 = vadd.f32 %v2977_v7, %v2693_v60  ;;  %v2347_v37 = vpop.f32.mrf.mxu1 }
 0x19c   : > { %v2819_v14 = vadd.f32 %v2818_v8, %v2554_v52  ;;  %v1788_v15 = vadd.f32 %v4648_v58, %v1787_v9  ;;  %v2558_v29 = vmax.f32 %v1796_v22, 0.0  ;;  %v2348_v60 = vadd.f32 %v4648_v58, %v2347_v37 }
 0x19d   : > { %v3815_v39 = vpop.f32.mrf.mxu0  ;;  %v4698_v20 = vadd.f32 %v2978_v5, %v2694_v4  ;;  %v4707_v0 = vpop.f32.mrf.mxu1  ;;  %v2353_v8 = vadd.f32 %v4648_v58, %v3951_v50  ;;  %v2695_v9 = vmax.f32 %v2345_v56, 0.0 }
 0x19e   : > { %v2820_v21 = vadd.f32 %v2819_v14, %v2555_v13  ;;  %v2556_v23 = vmax.f32 %v1788_v15, 0.0  ;;  %v1809_v40 = vadd.f32 %v4648_v58, %v3815_v39  ;;  %v2696_v5 = vmax.f32 %v2348_v60, 0.0 }
 0x19f   : > { %v1800_v26 = vpop.f32.mrf.mxu0  ;;  %v2360_v13 = vpop.f32.mrf.mxu1 }
 0x1a0   : > { %v2821_v28 = vadd.f32 %v2820_v21, %v2556_v23  ;;  %v1801_v31 = vadd.f32 %v4648_v58, %v1800_v26  ;;  %v2561_v57 = vmax.f32 %v1809_v40, 0.0  ;;  %v2697_v26 = vmax.f32 %v2353_v8, 0.0 }
 0x1a1   : > { %v3816_v33 = vpop.f32.mrf.mxu0 }
 0x1a2   : > { %v2822_v35 = vadd.f32 %v2821_v28, %v2557_v27  ;;  %v2559_v44 = vmax.f32 %v1801_v31, 0.0  ;;  %v1812_v63 = vadd.f32 %v4648_v58, %v3816_v33  ;;  %v2356_v27 = vadd.f32 %v4648_v58, %v3952_v17 }
 0x1a3   : > { %v1803_v34 = vpop.f32.mrf.mxu0  ;;  %v2986_v28 = vadd.f32 %v2696_v5, %v2695_v9 }
 0x1a4   : > { %v2823_v46 = vadd.f32 %v2822_v35, %v2558_v29  ;;  %v1804_v42 = vadd.f32 %v4648_v58, %v1803_v34  ;;  %v2562_v10 = vmax.f32 %v1812_v63, 0.0  ;;  %v3956_v29 = vpop.f32.mrf.mxu1  ;;  %v4205_v35 = vld [vmem:[%s4912_s3 + $0x8] sm:$0xff]  }
 0x1a5   : > { %v3819_v48 = vpop.f32.mrf.mxu0  ;;  %3994 = vmatpush3.bf16.msra.mxu1 %v4205_v35 }
 0x1a6   : > { %v2824_v62 = vadd.f32 %v2823_v46, %v2559_v44  ;;  %v2560_v54 = vmax.f32 %v1804_v42, 0.0  ;;  %v1825_v15 = vadd.f32 %v4648_v58, %v3819_v48  ;;  %v4206_v44 = vld [vmem:[%s4912_s3] sm:$0xff]   ;;  %v2698_v46 = vmax.f32 %v2356_v27, 0.0  ;;  %3995 = vmatprep.subr.bf16.mxu1 %v4243_v47  ;;  %v2363_v63 = vpop.f32.mrf.mxu1 }
 0x1a7   : > { %v1816_v2 = vpop.f32.mrf.mxu0  ;;  %v2987_v42 = vadd.f32 %v2986_v28, %v2697_v26  ;;  %v2361_v48 = vadd.f32 %v4648_v58, %v2360_v13  ;;  %v2364_v9 = vadd.f32 %v4648_v58, %v2363_v63  ;;  %v2369_v27 = vadd.f32 %v4648_v58, %v4707_v0 }
 0x1a8   : > { %v2825_v4 = vadd.f32 %v2824_v62, %v2560_v54  ;;  %v1817_v7 = vadd.f32 %v4648_v58, %v1816_v2  ;;  %v2565_v34 = vmax.f32 %v1825_v15, 0.0 }
 0x1a9   : > { %v3820_v52 = vpop.f32.mrf.mxu0  ;;  %3996 = vmatpush3.bf16.msra.mxu1 %v4206_v44  ;;  %v2988_v8 = vadd.f32 %v2987_v42, %v2698_v46 }
 0x1aa   : > { %v2826_v41 = vadd.f32 %v2825_v4, %v2561_v57  ;;  %v2563_v39 = vmax.f32 %v1817_v7, 0.0  ;;  %v1828_v50 = vadd.f32 %v4648_v58, %v3820_v52  ;;  %v2699_v52 = vmax.f32 %v2361_v48, 0.0  ;;  %4001 = vmatprep.subr.bf16.mxu1 %v4243_v47 }
 0x1ab   : > { %v1819_v14 = vpop.f32.mrf.mxu0 }
 0x1ac   : > { %v2827_v21 = vadd.f32 %v2826_v41, %v2562_v10  ;;  %v1820_v22 = vadd.f32 %v4648_v58, %v1819_v14  ;;  %v2566_v56 = vmax.f32 %v1828_v50, 0.0  ;;  %v4731_v14 = vpop.f32.mrf.mxu1  ;;  %v2989_v28 = vadd.f32 %v2988_v8, %v2699_v52 }
 0x1ad   : > { %v3823_v23 = vpop.f32.mrf.mxu0 }
 0x1ae   : > { %v2828_v31 = vadd.f32 %v2827_v21, %v2563_v39  ;;  %v2564_v33 = vmax.f32 %v1820_v22, 0.0  ;;  %v1841_v57 = vadd.f32 %v4648_v58, %v3823_v23 }
 0x1af   : > { %v1832_v37 = vpop.f32.mrf.mxu0 }
 0x1b0   : > { %v2829_v40 = vadd.f32 %v2828_v31, %v2564_v33  ;;  %v1833_v62 = vadd.f32 %v4648_v58, %v1832_v37  ;;  %v2569_v21 = vmax.f32 %v1841_v57, 0.0  ;;  %v2700_v31 = vmax.f32 %v2364_v9, 0.0  ;;  %v2376_v37 = vpop.f32.mrf.mxu1 }
 0x1b1   : > { %v3824_v17 = vpop.f32.mrf.mxu0 }
 0x1b2   : > { %v2830_v60 = vadd.f32 %v2829_v40, %v2565_v34  ;;  %v2567_v10 = vmax.f32 %v1833_v62, 0.0  ;;  %v1844_v41 = vadd.f32 %v4648_v58, %v3824_v17  ;;  %v2990_v62 = vadd.f32 %v2989_v28, %v2700_v31  ;;  %v3960_v57 = vpop.f32.mrf.mxu1 }
 0x1b3   : > { %v1835_v54 = vpop.f32.mrf.mxu0 }
 0x1b4   : > { %v2831_v2 = vadd.f32 %v2830_v60, %v2566_v56  ;;  %v1836_v4 = vadd.f32 %v4648_v58, %v1835_v54  ;;  %v2570_v33 = vmax.f32 %v1844_v41, 0.0  ;;  %v2701_v56 = vmax.f32 %v2369_v27, 0.0 }
 0x1b5   : > { %v3827_v7 = vpop.f32.mrf.mxu0  ;;  %v2372_v60 = vadd.f32 %v4648_v58, %v3956_v29 }
 0x1b6   : > { %v2832_v5 = vrot.slane %v2831_v2, 4  ;;  %v2568_v13 = vmax.f32 %v1836_v4, 0.0  ;;  %v1857_v34 = vadd.f32 %v4648_v58, %v3827_v7  ;;  %v2991_v41 = vadd.f32 %v2990_v62, %v2701_v56 }
 0x1b7   : > { %v1848_v15 = vpop.f32.mrf.mxu0 }
 0x1b8   : > { %v2833_v39 = vadd.f32 %v2832_v5, %v2831_v2  ;;  %v2838_v22 = vadd.f32 %v2568_v13, %v2567_v10  ;;  %v1849_v23 = vadd.f32 %v4648_v58, %v1848_v15  ;;  %v2573_v7 = vmax.f32 %v1857_v34, 0.0 }
 0x1b9   : > { %v3828_v26 = vpop.f32.mrf.mxu0  ;;  %v2702_v10 = vmax.f32 %v2372_v60, 0.0  ;;  %v2377_v13 = vadd.f32 %v4648_v58, %v2376_v37 }
 0x1ba   : > { %v2834_v50 = vrot.slane %v2833_v39, 2  ;;  %v2839_v35 = vadd.f32 %v2838_v22, %v2569_v21  ;;  %v2571_v17 = vmax.f32 %v1849_v23, 0.0  ;;  %v1860_v54 = vadd.f32 %v4648_v58, %v3828_v26  ;;  %v2379_v21 = vpop.f32.mrf.mxu1 }
 0x1bb   : > { %v1851_v40 = vpop.f32.mrf.mxu0  ;;  %v2380_v34 = vadd.f32 %v4648_v58, %v2379_v21 }
 0x1bc   : > { %v2835_v44 = vadd.f32 %v2834_v50, %v2833_v39  ;;  %v2840_v46 = vadd.f32 %v2839_v35, %v2570_v33  ;;  %v1852_v42 = vadd.f32 %v4648_v58, %v1851_v40  ;;  %v2574_v29 = vmax.f32 %v1860_v54, 0.0 }
 0x1bd   : > { %v3831_v48 = vpop.f32.mrf.mxu0  ;;  %v2703_v33 = vmax.f32 %v2377_v13, 0.0  ;;  %v2992_v35 = vadd.f32 %v2991_v41, %v2702_v10 }
 0x1be   : > { %v2836_v0 = vrot.slane %v2835_v44, 1  ;;  %v2841_v63 = vadd.f32 %v2840_v46, %v2571_v17  ;;  %v2572_v2 = vmax.f32 %v1852_v42, 0.0  ;;  %v1873_v22 = vadd.f32 %v4648_v58, %v3831_v48  ;;  %v3963_v46 = vpop.f32.mrf.mxu1 }
 0x1bf   : > { %v1864_v4 = vpop.f32.mrf.mxu0  ;;  %v2993_v54 = vadd.f32 %v2992_v35, %v2703_v33 }
 0x1c0   : > { %v2837_v52 = vadd.f32 %v2836_v0, %v2835_v44  ;;  %v2842_v8 = vadd.f32 %v2841_v63, %v2572_v2  ;;  %v1865_v9 = vadd.f32 %v4648_v58, %v1864_v4  ;;  %v2577_v56 = vmax.f32 %v1873_v22, 0.0 }
 0x1c1   : > { %v3832_v5 = vpop.f32.mrf.mxu0  ;;  %v2385_v63 = vadd.f32 %v4648_v58, %v4731_v14  ;;  %v2704_v2 = vmax.f32 %v2380_v34, 0.0 }
 0x1c2   : > { %v3026_v15 = vmul.f32 0.00390625, %v2837_v52  ;;  %v2843_v39 = vadd.f32 %v2842_v8, %v2573_v7  ;;  %v2575_v27 = vmax.f32 %v1865_v9, 0.0  ;;  %v1876_v44 = vadd.f32 %v4648_v58, %v3832_v5  ;;  %v2392_v7 = vpop.f32.mrf.mxu1 }
 0x1c3   : > { %v1867_v23 = vpop.f32.mrf.mxu0  ;;  %v2705_v13 = vmax.f32 %v2385_v63, 0.0  ;;  %v2393_v35 = vadd.f32 %v4648_v58, %v2392_v7 }
 0x1c4   : > { %v3034_v26 = vpack.c.bf16 %v3026_v15, %v3026_v15  ;;  %v2844_v28 = vadd.f32 %v2843_v39, %v2574_v29  ;;  %v1868_v31 = vadd.f32 %v4648_v58, %v1867_v23  ;;  %v2578_v4 = vmax.f32 %v1876_v44, 0.0  ;;  %v3964_v22 = vpop.f32.mrf.mxu1 }
 0x1c5   : > { %v3835_v50 = vpop.f32.mrf.mxu0  ;;  %v2388_v15 = vadd.f32 %v4648_v58, %v3960_v57  ;;  %v2994_v29 = vadd.f32 %v2993_v54, %v2704_v2 }
 0x1c6   : > { %v3073_v40 = vunpack.c.l.b16 %v3034_v26  ;;  %v2845_v37 = vadd.f32 %v2844_v28, %v2575_v27  ;;  %v2576_v17 = vmax.f32 %v1868_v31, 0.0  ;;  %v1889_v9 = vadd.f32 %v4648_v58, %v3835_v50 }
 0x1c7   : > { %v1880_v42 = vpop.f32.mrf.mxu0  ;;  %v2706_v50 = vmax.f32 %v2388_v15, 0.0  ;;  %v2995_v33 = vadd.f32 %v2994_v29, %v2705_v13 }
 0x1c8   : > { %v4747_v48 = vsel %vm3081_vm2, %v3073_v40, %v4673_v16  ;;  %v2846_v60 = vadd.f32 %v2845_v37, %v2576_v17  ;;  %v1881_v62 = vadd.f32 %v4648_v58, %v1880_v42  ;;  %v2581_v26 = vmax.f32 %v1889_v9, 0.0  ;;  %v2395_v37 = vpop.f32.mrf.mxu1 }
 0x1c9   : > { %v3836_v0 = vpop.f32.mrf.mxu0  ;;  %v2396_v63 = vadd.f32 %v4648_v58, %v2395_v37 }
 0x1ca   : > { %v2847_v52 = vadd.f32 %v2846_v60, %v2577_v56  ;;  %v2579_v5 = vmax.f32 %v1881_v62, 0.0  ;;  %v1892_v14 = vadd.f32 %v4648_v58, %v3836_v0  ;;  %v2707_v62 = vmax.f32 %v2393_v35, 0.0 }
 0x1cb   : > { %v1883_v8 = vpop.f32.mrf.mxu0  ;;  %v2996_v0 = vadd.f32 %v2995_v33, %v2706_v50  ;;  %v2708_v13 = vmax.f32 %v2396_v63, 0.0  ;;  %v2404_v50 = vadd.f32 %v4648_v58, %v3964_v22 }
 0x1cc   : > { %v2848_v10 = vadd.f32 %v2847_v52, %v2578_v4  ;;  %v1884_v16 = vadd.f32 %v4648_v58, %v1883_v8  ;;  %v2582_v34 = vmax.f32 %v1892_v14, 0.0  ;;  %v3967_v52 = vpop.f32.mrf.mxu1 }
 0x1cd   : > { %v3839_v41 = vpop.f32.mrf.mxu0 }
 0x1ce   : > { %v2849_v39 = vadd.f32 %v2848_v10, %v2579_v5  ;;  %v2580_v21 = vmax.f32 %v1884_v16, 0.0  ;;  %v1905_v44 = vadd.f32 %v4648_v58, %v3839_v41  ;;  %v2401_v16 = vadd.f32 %v4648_v58, %v3963_v46 }
 0x1cf   : > { %v1896_v23 = vpop.f32.mrf.mxu0  ;;  %v2997_v41 = vadd.f32 %v2996_v0, %v2707_v62 }
 0x1d0   : > { %v2850_v27 = vadd.f32 %v2849_v39, %v2580_v21  ;;  %v1897_v28 = vadd.f32 %v4648_v58, %v1896_v23  ;;  %v2585_v8 = vmax.f32 %v1905_v44, 0.0  ;;  %v2408_v39 = vpop.f32.mrf.mxu1 }
 0x1d1   : > { %v3840_v31 = vpop.f32.mrf.mxu0  ;;  %v2998_v33 = vadd.f32 %v2997_v41, %v2708_v13  ;;  %v2409_v62 = vadd.f32 %v4648_v58, %v2408_v39 }
 0x1d2   : > { %v2851_v40 = vadd.f32 %v2850_v27, %v2581_v26  ;;  %v2583_v17 = vmax.f32 %v1897_v28, 0.0  ;;  %v1908_v2 = vadd.f32 %v4648_v58, %v3840_v31  ;;  %v2709_v31 = vmax.f32 %v2401_v16, 0.0 }
 0x1d3   : > { %v1899_v57 = vpop.f32.mrf.mxu0 }
 0x1d4   : > { %v2852_v42 = vadd.f32 %v2851_v40, %v2582_v34  ;;  %v1900_v56 = vadd.f32 %v4648_v58, %v1899_v57  ;;  %v2586_v15 = vmax.f32 %v1908_v2, 0.0  ;;  %v3968_v40 = vpop.f32.mrf.mxu1 }
 0x1d5   : > { %v3843_v60 = vpop.f32.mrf.mxu0 }
 0x1d6   : > { %v2853_v54 = vadd.f32 %v2852_v42, %v2583_v17  ;;  %v2584_v4 = vmax.f32 %v1900_v56, 0.0  ;;  %v1921_v21 = vadd.f32 %v4648_v58, %v3843_v60  ;;  %v2710_v56 = vmax.f32 %v2404_v50, 0.0 }
 0x1d7   : > { %v1912_v7 = vpop.f32.mrf.mxu0  ;;  %v2999_v60 = vadd.f32 %v2998_v33, %v2709_v31 }
 0x1d8   : > { %v2854_v9 = vadd.f32 %v2853_v54, %v2584_v4  ;;  %v1913_v5 = vadd.f32 %v4648_v58, %v1912_v7  ;;  %v2589_v57 = vmax.f32 %v1921_v21, 0.0  ;;  %v2411_v54 = vpop.f32.mrf.mxu1 }
 0x1d9   : > { %v3844_v10 = vpop.f32.mrf.mxu0  ;;  %v2412_v16 = vadd.f32 %v4648_v58, %v2411_v54 }
 0x1da   : > { %v2855_v29 = vadd.f32 %v2854_v9, %v2585_v8  ;;  %v2587_v23 = vmax.f32 %v1913_v5, 0.0  ;;  %v1924_v46 = vadd.f32 %v4648_v58, %v3844_v10  ;;  %v2711_v5 = vmax.f32 %v2409_v62, 0.0 }
 0x1db   : > { %v1915_v14 = vpop.f32.mrf.mxu0  ;;  %v3000_v10 = vadd.f32 %v2999_v60, %v2710_v56  ;;  %v2712_v31 = vmax.f32 %v2412_v16, 0.0  ;;  %v2420_v56 = vadd.f32 %v4648_v58, %v3968_v40 }
 0x1dc   : > { %v2856_v26 = vadd.f32 %v2855_v29, %v2586_v15  ;;  %v1916_v27 = vadd.f32 %v4648_v58, %v1915_v14  ;;  %v2590_v0 = vmax.f32 %v1924_v46, 0.0  ;;  %v3971_v29 = vpop.f32.mrf.mxu1 }
 0x1dd   : > { %v3847_v28 = vpop.f32.mrf.mxu0 }
 0x1de   : > { %v2857_v35 = vadd.f32 %v2856_v26, %v2587_v23  ;;  %v2588_v34 = vmax.f32 %v1916_v27, 0.0  ;;  %v1937_v2 = vadd.f32 %v4648_v58, %v3847_v28  ;;  %v2417_v27 = vadd.f32 %v4648_v58, %v3967_v52 }
 0x1df   : > { %v1928_v37 = vpop.f32.mrf.mxu0  ;;  %v3001_v28 = vadd.f32 %v3000_v10, %v2711_v5 }
 0x1e0   : > { %v2858_v44 = vadd.f32 %v2857_v35, %v2588_v34  ;;  %v1929_v17 = vadd.f32 %v4648_v58, %v1928_v37  ;;  %v2593_v14 = vmax.f32 %v1937_v2, 0.0  ;;  %v2424_v35 = vpop.f32.mrf.mxu1 }
 0x1e1   : > { %v3848_v42 = vpop.f32.mrf.mxu0  ;;  %v3002_v60 = vadd.f32 %v3001_v28, %v2712_v31 }
 0x1e2   : > { %v2859_v63 = vadd.f32 %v2858_v44, %v2589_v57  ;;  %v2591_v4 = vmax.f32 %v1929_v17, 0.0  ;;  %v1940_v13 = vadd.f32 %v4648_v58, %v3848_v42  ;;  %v2713_v42 = vmax.f32 %v2417_v27, 0.0 }
 0x1e3   : > { %v1931_v22 = vpop.f32.mrf.mxu0 }
 0x1e4   : > { %v2860_v7 = vadd.f32 %v2859_v63, %v2590_v0  ;;  %v1932_v8 = vadd.f32 %v4648_v58, %v1931_v22  ;;  %v2594_v50 = vmax.f32 %v1940_v13, 0.0  ;;  %v3972_v63 = vpop.f32.mrf.mxu1 }
 0x1e5   : > { %v3851_v9 = vpop.f32.mrf.mxu0 }
 0x1e6   : > { %v2861_v41 = vadd.f32 %v2860_v7, %v2591_v4  ;;  %v2592_v15 = vmax.f32 %v1932_v8, 0.0  ;;  %v1953_v34 = vadd.f32 %v4648_v58, %v3851_v9  ;;  %v2714_v7 = vmax.f32 %v2420_v56, 0.0 }
 0x1e7   : > { %v1944_v39 = vpop.f32.mrf.mxu0  ;;  %v3003_v8 = vadd.f32 %v3002_v60, %v2713_v42  ;;  %v2425_v9 = vadd.f32 %v4648_v58, %v2424_v35 }
 0x1e8   : > { %v2862_v21 = vadd.f32 %v2861_v41, %v2592_v15  ;;  %v1945_v23 = vadd.f32 %v4648_v58, %v1944_v39  ;;  %v2597_v22 = vmax.f32 %v1953_v34, 0.0  ;;  %v2427_v41 = vpop.f32.mrf.mxu1 }
 0x1e9   : > { %v3852_v26 = vpop.f32.mrf.mxu0 }
 0x1ea   : > { %v2863_v33 = vadd.f32 %v2862_v21, %v2593_v14  ;;  %v2595_v37 = vmax.f32 %v1945_v23, 0.0  ;;  %v1956_v52 = vadd.f32 %v4648_v58, %v3852_v26  ;;  %v2715_v21 = vmax.f32 %v2425_v9, 0.0 }
 0x1eb   : > { %v1947_v46 = vpop.f32.mrf.mxu0  ;;  %v3004_v23 = vadd.f32 %v3003_v8, %v2714_v7  ;;  %v2428_v26 = vadd.f32 %v4648_v58, %v2427_v41 }
 0x1ec   : > { %v2864_v57 = vadd.f32 %v2863_v33, %v2594_v50  ;;  %v1948_v44 = vadd.f32 %v4648_v58, %v1947_v46  ;;  %v2598_v5 = vmax.f32 %v1956_v52, 0.0  ;;  %v3975_v33 = vpop.f32.mrf.mxu1 }
 0x1ed   : > { %v3855_v17 = vpop.f32.mrf.mxu0  ;;  %v3005_v42 = vadd.f32 %v3004_v23, %v2715_v21  ;;  %v2716_v56 = vmax.f32 %v2428_v26, 0.0 }
 0x1ee   : > { %v2865_v62 = vadd.f32 %v2864_v57, %v2595_v37  ;;  %v2596_v0 = vmax.f32 %v1948_v44, 0.0  ;;  %v1969_v15 = vadd.f32 %v4648_v58, %v3855_v17  ;;  %v2433_v17 = vadd.f32 %v4648_v58, %v3971_v29 }
 0x1ef   : > { %v1960_v54 = vpop.f32.mrf.mxu0 }
 0x1f0   : > { %v2866_v2 = vadd.f32 %v2865_v62, %v2596_v0  ;;  %v1961_v16 = vadd.f32 %v4648_v58, %v1960_v54  ;;  %v2601_v34 = vmax.f32 %v1969_v15, 0.0  ;;  %v2440_v0 = vpop.f32.mrf.mxu1 }
 0x1f1   : > { %v3856_v4 = vpop.f32.mrf.mxu0 }
 0x1f2   : > { %v2867_v10 = vadd.f32 %v2866_v2, %v2597_v22  ;;  %v2599_v28 = vmax.f32 %v1961_v16, 0.0  ;;  %v1972_v31 = vadd.f32 %v4648_v58, %v3856_v4  ;;  %v3006_v16 = vadd.f32 %v3005_v42, %v2716_v56  ;;  %v3976_v15 = vpop.f32.mrf.mxu1 }
 0x1f3   : > { %v1963_v40 = vpop.f32.mrf.mxu0 }
 0x1f4   : > { %v2868_v13 = vadd.f32 %v2867_v10, %v2598_v5  ;;  %v1964_v39 = vadd.f32 %v4648_v58, %v1963_v40  ;;  %v2602_v62 = vmax.f32 %v1972_v31, 0.0  ;;  %v2717_v5 = vmax.f32 %v2433_v17, 0.0 }
 0x1f5   : > { %v3859_v14 = vpop.f32.mrf.mxu0  ;;  %v2436_v10 = vadd.f32 %v4648_v58, %v3972_v63 }
 0x1f6   : > { %v2869_v27 = vrot.slane %v2868_v13, 4  ;;  %v2600_v50 = vmax.f32 %v1964_v39, 0.0  ;;  %v1985_v54 = vadd.f32 %v4648_v58, %v3859_v14  ;;  %v3007_v31 = vadd.f32 %v3006_v16, %v2717_v5 }
 0x1f7   : > { %v1976_v35 = vpop.f32.mrf.mxu0 }
 0x1f8   : > { %v2870_v46 = vadd.f32 %v2869_v27, %v2868_v13  ;;  %v2875_v37 = vadd.f32 %v2600_v50, %v2599_v28  ;;  %v1977_v57 = vadd.f32 %v4648_v58, %v1976_v35  ;;  %v2605_v14 = vmax.f32 %v1985_v54, 0.0 }
 0x1f9   : > { %v3860_v44 = vpop.f32.mrf.mxu0  ;;  %v2718_v28 = vmax.f32 %v2436_v10, 0.0  ;;  %v2441_v50 = vadd.f32 %v4648_v58, %v2440_v0 }
 0x1fa   : > { %v2871_v60 = vrot.slane %v2870_v46, 2  ;;  %v2876_v52 = vadd.f32 %v2875_v37, %v2601_v34  ;;  %v2603_v4 = vmax.f32 %v1977_v57, 0.0  ;;  %v1988_v40 = vadd.f32 %v4648_v58, %v3860_v44  ;;  %v2443_v34 = vpop.f32.mrf.mxu1 }
 0x1fb   : > { %v1979_v22 = vpop.f32.mrf.mxu0 }
 0x1fc   : > { %v2872_v2 = vadd.f32 %v2871_v60, %v2870_v46  ;;  %v2877_v7 = vadd.f32 %v2876_v52, %v2602_v62  ;;  %v1980_v8 = vadd.f32 %v4648_v58, %v1979_v22  ;;  %v2606_v63 = vmax.f32 %v1988_v40, 0.0  ;;  %v4799_v52 = vld [vmem:[%s4911_s2] ss:$0 sm:$0xff] }
 0x1fd   : > { %v3863_v9 = vpop.f32.mrf.mxu0  ;;  %v2719_v60 = vmax.f32 %v2441_v50, 0.0  ;;  %v3008_v62 = vadd.f32 %v3007_v31, %v2718_v28  ;;  %v2444_v0 = vadd.f32 %v4799_v52, %v2443_v34  ;;  %v2449_v10 = vadd.f32 %v4799_v52, %v3975_v33 }
 0x1fe   : > { %v2873_v29 = vrot.slane %v2872_v2, 1  ;;  %v2878_v41 = vadd.f32 %v2877_v7, %v2603_v4  ;;  %v2604_v13 = vmax.f32 %v1980_v8, 0.0  ;;  %v2001_v37 = vadd.f32 %v4648_v58, %v3863_v9  ;;  %v3979_v7 = vpop.f32.mrf.mxu1 }
 0x1ff   : > { %v1992_v39 = vpop.f32.mrf.mxu0  ;;  %v2009_v8 = vadd.f32 %v4799_v52, %v4443_v51  ;;  %v3009_v16 = vadd.f32 %v3008_v62, %v2719_v60  ;;  %v2020_v33 = vadd.f32 %v4799_v52, %v4452_v55  ;;  %v2033_v55 = vadd.f32 %v4799_v52, %v4462_v1 }
 0x200   : > { %v2874_v21 = vadd.f32 %v2873_v29, %v2872_v2  ;;  %v2879_v23 = vadd.f32 %v2878_v41, %v2604_v13  ;;  %v1993_v26 = vadd.f32 %v4648_v58, %v1992_v39  ;;  %v2609_v9 = vmax.f32 %v2001_v37, 0.0  ;;  %v2456_v39 = vpop.f32.mrf.mxu1 }
 0x201   : > { %v3864_v27 = vpop.f32.mrf.mxu0  ;;  %v2720_v29 = vmax.f32 %v2444_v0, 0.0  ;;  %v2012_v41 = vadd.f32 %v4799_v52, %v4458_v61  ;;  %v2025_v61 = vadd.f32 %v4799_v52, %v4465_v6  ;;  %v2614_v34 = vmax.f32 %v2020_v33, 0.0 }
 0x202   : > { %v3027_v35 = vmul.f32 0.00390625, %v2874_v21  ;;  %v2880_v46 = vadd.f32 %v2879_v23, %v2605_v14  ;;  %v2607_v17 = vmax.f32 %v1993_v26, 0.0  ;;  %v2004_v2 = vadd.f32 %v4799_v52, %v3864_v27  ;;  %v3980_v31 = vpop.f32.mrf.mxu1 }
 0x203   : > { %v1995_v57 = vpop.f32.mrf.mxu0  ;;  %v2017_v21 = vadd.f32 %v4799_v52, %v4441_v49  ;;  %v2611_v14 = vmax.f32 %v2009_v8, 0.0  ;;  %v2721_v23 = vmax.f32 %v2449_v10, 0.0  ;;  %v3010_v26 = vadd.f32 %v3009_v16, %v2720_v29 }
 0x204   : > { %v3035_v44 = vpack.c.bf16 %v3027_v35, %v3027_v35  ;;  %v2881_v42 = vadd.f32 %v2880_v46, %v2606_v63  ;;  %v1996_v56 = vadd.f32 %v4648_v58, %v1995_v57  ;;  %v2610_v40 = vmax.f32 %v2004_v2, 0.0  ;;  %v2459_v57 = vpop.f32.mrf.mxu1 }
 0x205   : > { %v2612_v27 = vmax.f32 %v2012_v41, 0.0  ;;  %v2613_v50 = vmax.f32 %v2017_v21, 0.0  ;;  %v3011_v46 = vadd.f32 %v3010_v26, %v2721_v23  ;;  %v2457_v49 = vadd.f32 %v4799_v52, %v2456_v39 }
 0x206   : > { %v3074_v54 = vunpack.c.l.b16 %v3035_v44  ;;  %v2882_v22 = vadd.f32 %v2881_v42, %v2607_v17  ;;  %v2608_v4 = vmax.f32 %v1996_v56, 0.0  ;;  %v2615_v44 = vmax.f32 %v2025_v61, 0.0 }
 0x207   : > { %v2723_v42 = vmax.f32 %v2457_v49, 0.0  ;;  %v2460_v6 = vadd.f32 %v4799_v52, %v2459_v57  ;;  %v2036_v60 = vadd.f32 %v4799_v52, %v4469_v12  ;;  %v2465_v2 = vadd.f32 %v4799_v52, %v3979_v7 }
 0x208   : > { %v4806_v58 = vsel %vm3083_vm3, %v3074_v54, %v4747_v48  ;;  %v2883_v5 = vadd.f32 %v2882_v22, %v2608_v4  ;;  %v2452_v48 = vadd.f32 %v4799_v52, %v3976_v15  ;;  %v2028_v15 = vadd.f32 %v4799_v52, %v4474_v19 }
 0x209   : > { %v2617_v54 = vmax.f32 %v2033_v55, 0.0  ;;  %v2041_v19 = vadd.f32 %v4799_v52, %v4481_v30  ;;  %v2724_v1 = vmax.f32 %v2460_v6, 0.0  ;;  %v2618_v8 = vmax.f32 %v2036_v60, 0.0 }
 0x20a   : > { %v2884_v13 = vadd.f32 %v2883_v5, %v2609_v9  ;;  %v2722_v63 = vmax.f32 %v2452_v48, 0.0  ;;  %v2616_v62 = vmax.f32 %v2028_v15, 0.0  ;;  %v2044_v9 = vadd.f32 %v4799_v52, %v4490_v43 }
 0x20b   : > { %v2049_v10 = vadd.f32 %v4799_v52, %v4478_v25  ;;  %v2619_v12 = vmax.f32 %v2041_v19, 0.0  ;;  %v2725_v29 = vmax.f32 %v2465_v2, 0.0  ;;  %v2468_v41 = vadd.f32 %v4799_v52, %v3980_v31 }
 0x20c   : > { %v2885_v51 = vadd.f32 %v2884_v13, %v2610_v40  ;;  %v3012_v56 = vadd.f32 %v3011_v46, %v2722_v63  ;;  %v2052_v30 = vadd.f32 %v4799_v52, %v4485_v36  ;;  %v2620_v7 = vmax.f32 %v2044_v9, 0.0 }
 0x20d   : > { %v2621_v39 = vmax.f32 %v2049_v10, 0.0  ;;  %v2057_v21 = vadd.f32 %v4799_v52, %v4497_v59  ;;  %v2060_v25 = vadd.f32 %v4799_v52, %v4508_v11  ;;  %v2065_v26 = vadd.f32 %v4799_v52, %v4494_v53 }
 0x20e   : > { %v2886_v28 = vadd.f32 %v2885_v51, %v2611_v14  ;;  %v3013_v4 = vadd.f32 %v3012_v56, %v2723_v42  ;;  %v2726_v14 = vmax.f32 %v2468_v41, 0.0  ;;  %v2622_v23 = vmax.f32 %v2052_v30, 0.0 }
 0x20f   : > { %v2623_v33 = vmax.f32 %v2057_v21, 0.0  ;;  %v2624_v31 = vmax.f32 %v2060_v25, 0.0  ;;  %v2943_v59 = vrot.slane %v4618_v45, 4  ;;  %v2625_v61 = vmax.f32 %v2065_v26, 0.0 }
 0x210   : > { %v2887_v35 = vadd.f32 %v2886_v28, %v2612_v27  ;;  %v3014_v40 = vadd.f32 %v3013_v4, %v2724_v1  ;;  %v2068_v28 = vadd.f32 %v4799_v52, %v4501_v3  ;;  %v2980_v11 = vrot.slane %v4698_v20, 4 }
 0x211   : > { %v2076_v53 = vadd.f32 %v4799_v52, %v4523_v38  ;;  %v2944_v15 = vadd.f32 %v2943_v59, %v4618_v45  ;;  %v2081_v3 = vadd.f32 %v4799_v52, %v4512_v18  ;;  %v4212_v59 = vld [vmem:[%s4914_s5 + $0x10] sm:$0xff]  }
 0x212   : > { %v2888_v37 = vadd.f32 %v2887_v35, %v2613_v50  ;;  %v3015_v51 = vadd.f32 %v3014_v40, %v2725_v29  ;;  %v2073_v35 = vadd.f32 %v4799_v52, %v4516_v24  ;;  %v2626_v49 = vmax.f32 %v2068_v28, 0.0  ;;  %v4208_v28 = vld [vmem:[%s4914_s5 + $0x30] sm:$0xff]  }
 0x213   : > { %v2981_v57 = vadd.f32 %v2980_v11, %v4698_v20  ;;  %v2084_v24 = vadd.f32 %v4799_v52, %v4520_v32  ;;  %v2945_v56 = vrot.slane %v2944_v15, 2  ;;  %v2629_v6 = vmax.f32 %v2081_v3, 0.0  ;;  %v3534_v11 = vld [vmem:[%s4913_s4] ss:$0 sm:$0xff] }
 0x214   : > { %v2889_v17 = vadd.f32 %v2888_v37, %v2614_v34  ;;  %v3016_v36 = vadd.f32 %v3015_v51, %v2726_v14  ;;  %v2627_v37 = vmax.f32 %v2073_v35, 0.0  ;;  %v4214_v35 = vld [vmem:[%s4914_s5] sm:$0xff]  }
 0x215   : > { %v2982_v60 = vrot.slane %v2981_v57, 2 }
 0x216   : > { %v2890_v0 = vadd.f32 %v2889_v17, %v2615_v44  ;;  %v3017_v46 = vrot.slane %v3016_v36, 4  ;;  %v2628_v17 = vmax.f32 %v2076_v53, 0.0 }
 0x217   : > { %v2983_v19 = vadd.f32 %v2982_v60, %v2981_v57 }
 0x218   : > { %v2891_v22 = vadd.f32 %v2890_v0, %v2616_v62  ;;  %v3018_v44 = vadd.f32 %v3017_v46, %v3016_v36  ;;  %v2630_v0 = vmax.f32 %v2084_v24, 0.0 }
 0x219   : > { %v2984_v4 = vrot.slane %v2983_v19, 1 }
 0x21a   : > { %v2892_v5 = vadd.f32 %v2891_v22, %v2617_v54  ;;  %v3019_v62 = vrot.slane %v3018_v44, 2  ;;  %v2946_v54 = vadd.f32 %v2945_v56, %v2944_v15 }
 0x21b   : > { %v2985_v52 = vadd.f32 %v2984_v4, %v2983_v19 }
 0x21c   : > { %v2893_v16 = vadd.f32 %v2892_v5, %v2618_v8  ;;  %v3020_v22 = vadd.f32 %v3019_v62, %v3018_v44  ;;  %v2947_v20 = vrot.slane %v2946_v54, 1 }
 0x21d   : > { %v3030_v29 = vmul.f32 0.00390625, %v2985_v52 }
 0x21e   : > { %v2894_v13 = vadd.f32 %v2893_v16, %v2619_v12  ;;  %v3021_v8 = vrot.slane %v3020_v22, 1  ;;  %v2948_v32 = vadd.f32 %v2947_v20, %v2946_v54 }
 0x220   : > { %v2895_v43 = vadd.f32 %v2894_v13, %v2620_v7  ;;  %v3022_v10 = vadd.f32 %v3021_v8, %v3020_v22  ;;  %v3029_v16 = vmul.f32 0.00390625, %v2948_v32  ;;  %v3038_v13 = vpack.c.bf16 %v3030_v29, %v3030_v29 }
 0x222   : > { %v2896_v48 = vadd.f32 %v2895_v43, %v2621_v39  ;;  %v3031_v40 = vmul.f32 0.00390625, %v3022_v10  ;;  %v3037_v7 = vpack.c.bf16 %v3029_v16, %v3029_v16  ;;  %v3077_v51 = vunpack.c.l.b16 %v3038_v13 }
 0x224   : > { %v2897_v27 = vadd.f32 %v2896_v48, %v2622_v23  ;;  %v3039_v21 = vpack.c.bf16 %v3031_v40, %v3031_v40  ;;  %v3076_v14 = vunpack.c.l.b16 %v3037_v7 }
 0x226   : > { %v2898_v50 = vadd.f32 %v2897_v27, %v2623_v33  ;;  %v3078_v25 = vunpack.c.l.b16 %v3039_v21  ;;  %v4207_v27 = vld [vmem:[%s4914_s5 + $0x38] sm:$0xff]  }
 0x228   : > { %v2899_v63 = vadd.f32 %v2898_v50, %v2624_v31  ;;  %v4210_v31 = vld [vmem:[%s4914_s5 + $0x20] sm:$0xff]   ;;  %v4211_v50 = vld [vmem:[%s4914_s5 + $0x18] sm:$0xff]  }
 0x22a   : > { %v2900_v34 = vadd.f32 %v2899_v63, %v2625_v61  ;;  %v4213_v61 = vld [vmem:[%s4914_s5 + $0x8] sm:$0xff]  }
 0x22c   : > { %v2901_v55 = vadd.f32 %v2900_v34, %v2626_v49 }
 0x22e   : > { %v2902_v42 = vadd.f32 %v2901_v55, %v2627_v37 }
 0x230   : > { %v2903_v38 = vadd.f32 %v2902_v42, %v2628_v17 }
 0x232   : > { %v2904_v45 = vadd.f32 %v2903_v38, %v2629_v6 }
 0x234   : > { %v2905_v18 = vadd.f32 %v2904_v45, %v2630_v0 }
 0x236   : > { %v2906_v2 = vrot.slane %v2905_v18, 4 }
 0x238   : > { %v2907_v1 = vadd.f32 %v2906_v2, %v2905_v18 }
 0x23a   : > { %v2908_v9 = vrot.slane %v2907_v1, 2 }
 0x23c   : > { %v2909_v5 = vadd.f32 %v2908_v9, %v2907_v1 }
 0x23e   : > { %v2910_v12 = vrot.slane %v2909_v5, 1 }
 0x240   : > { %v2911_v41 = vadd.f32 %v2910_v12, %v2909_v5 }
 0x242   : > { %v3028_v30 = vmul.f32 0.00390625, %v2911_v41 }
 0x244   : > { %v3036_v39 = vpack.c.bf16 %v3028_v30, %v3028_v30 }
 0x246   : > { %v3075_v43 = vunpack.c.l.b16 %v3036_v39 }
 0x248   : > { %v3086_v23 = vsel %vm3085_vm4, %v3075_v43, %v4806_v58  ;;  %v4209_v58 = vld [vmem:[%s4914_s5 + $0x28] sm:$0xff]  }
 0x249   : > { %v3088_v48 = vsel %vm3087_vm5, %v3076_v14, %v3086_v23 }
 0x24a   : > { %v3090_v26 = vsel %vm3089_vm6, %v3077_v51, %v3088_v48 }
 0x24b   : > { %v3092_v33 = vsel %vm3091_vm7, %v3078_v25, %v3090_v26 }
 0x24c   : > { %v3093_v36 = vpack.c.b16 %v3092_v33, %v3092_v33 }
 0x24e   : > { %3998 = vmatmul.mubr.bf16.vlgmr.msra.gmra.mxu1 %v3093_v36 }
 0x24f   : > { %4002 = vmatpush3.bf16.msra.mxu1 %v4207_v27  ;;  %4017 = vmatprep.mubr.msk.bf16.mxu1 %vm4244_vm1, %v4243_v47 }
 0x250   : > { %4003 = vmatprep.subr.bf16.mxu1 %v4243_v47 }
 0x253   : > { %4004 = vmatpush3.bf16.msra.mxu1 %v4208_v28 }
 0x254   : > { %4005 = vmatprep.subr.bf16.mxu1 %v4243_v47 }
 0x257   : > { %4006 = vmatpush3.bf16.msra.mxu1 %v4209_v58 }
 0x258   : > { %4007 = vmatprep.subr.bf16.mxu1 %v4243_v47 }
 0x25b   : > { %4008 = vmatpush3.bf16.msra.mxu1 %v4210_v31 }
 0x25c   : > { %4009 = vmatprep.subr.bf16.mxu1 %v4243_v47 }
 0x25f   : > { %4010 = vmatpush3.bf16.msra.mxu1 %v4211_v50 }
 0x260   : > { %4011 = vmatprep.subr.bf16.mxu1 %v4243_v47 }
 0x263   : > { %4012 = vmatpush3.bf16.msra.mxu1 %v4212_v59 }
 0x264   : > { %4013 = vmatprep.subr.bf16.mxu1 %v4243_v47 }
 0x267   : > { %4014 = vmatpush3.bf16.msra.mxu1 %v4213_v61 }
 0x268   : > { %4015 = vmatprep.subr.bf16.mxu1 %v4243_v47  ;;  %v3543_v47 = vld [vmem:[%s4915_s6] ss:$0 sm:$0xff] }
 0x26b   : > { %4016 = vmatpush3.bf16.msra.mxu1 %v4214_v35 }
 0x30e   : > { %v3177_v63 = vpop.f32.mrf.mxu1 }
 0x30f   : > { %v3178_v46 = vadd.f32 %v3534_v11, %v3177_v63 }
 0x310   : > { %v3999_v49 = vpop.f32.mrf.mxu1 }
 0x311   : > { %v3183_v53 = vmax.f32 %v3178_v46, 0.0 }
 0x312   : > { %v3180_v34 = vpop.f32.mrf.mxu1 }
 0x313   : > { %v3184_v15 = vpack.c.bf16 %v3183_v53, %v3183_v53 }
 0x314   : > { %v4000_v3 = vpop.f32.mrf.mxu1 }
 0x315   : > { %4018 = vmatmul.mubr.bf16.vlgmr.msra.gmra.mxu1 %v3184_v15 }
 0x3d5   : > { %v3290_v37 = vpop.f32.mrf.mxu1 }
 0x3d6   : > { %v3291_v57 = vadd.f32 %v3543_v47, %v3290_v37 }
 0x3d7   : > { %v4019_v55 = vpop.f32.mrf.mxu1 }
 0x3d8   : > { %v3296_v44 = vmul.f32 %v3291_v57, %v3291_v57 }
 0x3d9   : > { %v3293_v24 = vpop.f32.mrf.mxu1 }
 0x3da   : > { %3297 = vadd.xlane.f32.xlu0 %v3296_v44 }
 0x3db   : > { %v4020_v17 = vpop.f32.mrf.mxu1 }
 0x463   : > { %v3298_v42 = vpop.xlane.xlu0 %3297 }
 0x464   : > { %v3299_v56 = vmax.f32 %v3298_v42, 1e-24 }
 0x466   : > { %4215 = vrsqrt.f32 %v3299_v56 }
 0x473   : > { %v4216_v6 = vpop.eup %4215 }
 0x474   : > { %v3301_v60 = vmul.f32 %v4216_v6, %v3291_v57 }
 0x476   : > { %3302 = vst [vmem:[%s317_s13] sm:$0xff] %v3301_v60 }
 0x477 PF: > { %s17_s26 = sadd.s32 1, %s4241_s26   ;;  %s4917_s24 = smov %s4237_s25 }
 0x478   : > { %p14_p5 = scmp.ge.s32.totalorder %s17_s26, 4   ;;  %s4918_s25 = smov %s4920_s27 }
 0x47a   :  { %16 = sbr.rel (!%p14_p5) target bundleno = 2 (0x2), region = 78 }

</bundles_post_ra>
